<compile_context>
chip_gen: v7x
topology: tpu7x:2x2x1
jax: 0.10.0
libtpu: 0.0.40
codegen_flags: <defaults>
</compile_context>

<pallas_src>
import math
import functools

import jax
import jax.numpy as jnp
from jax.experimental import pallas as pl
from jax.experimental.pallas import tpu as pltpu

NEG_INF = -1e9  # intentional stand-in for -inf in the causal mask (max-subtraction precedes exp)


# ----------------------------------------------------------------------------
# small math helper (pure jnp; usable inside the Pallas kernel and the reference)
# ----------------------------------------------------------------------------
def _layernorm(x, g, b, eps=1e-5):
    mu = jnp.mean(x, axis=-1, keepdims=True)
    var = jnp.mean((x - mu) ** 2, axis=-1, keepdims=True)
    return (x - mu) * jax.lax.rsqrt(var + eps) * g + b


# ----------------------------------------------------------------------------
# the single fused Pallas kernel
# ----------------------------------------------------------------------------
def fuzzy_encoder_kernel(tok_ref, feat_ref, cs_ref, emb_pe_ref,
                         wqkv_ref, wo_ref, w1_ref, w2_ref, vecs_ref,
                         out_ref, o_scratch, *, nlayers, nhead, ntoken):
    T, D = out_ref.shape
    H = nhead
    dh = D // H
    NH = w1_ref.shape[2]          # dim_feedforward

    # ---- FuzzySystem: membership -> fire -> norm -> (NaN->1) -> scalar weight --------------
    center = cs_ref[0]                                                    # [R, F]
    sigma = cs_ref[1]                                                     # [R, F]
    delta = (feat_ref[...] - center) / sigma
    # prod_f exp(-(d/s)^2/2) == exp(-0.5 * sum_f (d/s)^2)  (exact; avoids a mul-reduce)
    prod = jnp.exp(-0.5 * jnp.sum(delta * delta, axis=1, keepdims=True))  # [R, 1]
    total = jnp.sum(prod)
    prod_n = prod / jnp.where(total == 0.0, 1.0, total)                   # norm_layer semantics
    prod_n = jnp.where(jnp.isnan(prod_n), 1.0, prod_n)                    # math.isnan -> 1.0
    fuzzy_scale = jnp.sum(prod_n)      # all rule encoders share weights -> single scalar weight

    # ---- embedding lookup (one-hot @ table, MXU) + positional encoding ---------------------
    # tokens live in SMEM; build the one-hot with T (=8) static scalar reads.
    row = jax.lax.broadcasted_iota(jnp.int32, (T, ntoken), 0)
    col = jax.lax.broadcasted_iota(jnp.int32, (T, ntoken), 1)
    onehot = jnp.zeros((T, ntoken), jnp.float32)
    for i in range(T):
        onehot = jnp.where(jnp.logical_and(row == i, col == tok_ref[i]), 1.0, onehot)
    table = emb_pe_ref[0:ntoken, :].astype(jnp.bfloat16)     # sqrt(D) already folded host-side
    pe = emb_pe_ref[ntoken:ntoken + T, :]                    # f32
    x = jnp.dot(onehot.astype(jnp.bfloat16), table,
                preferred_element_type=jnp.float32) + pe                  # [T, D] f32

    # ---- causal mask built in-kernel (no DMA) ----------------------------------------------
    r = jax.lax.broadcasted_iota(jnp.int32, (T, T), 0)
    c = jax.lax.broadcasted_iota(jnp.int32, (T, T), 1)
    mask = jnp.where(r >= c, 0.0, NEG_INF).astype(jnp.float32)            # [T, T]

    # ---- nlayers x post-norm TransformerEncoderLayer (static unroll, weights VMEM-resident) --
    for l in range(nlayers):
        # merged QKV projection: ONE [T,D]@[D,3D] bf16 MXU push (scale folded into Q columns)
        bqkv = vecs_ref[l, 0:1, :3 * D]                                   # [1, 3D] f32
        qkv = jnp.dot(x.astype(jnp.bfloat16), wqkv_ref[l],
                      preferred_element_type=jnp.float32) + bqkv          # [T, 3D] f32

        # per-head attention core (tiny [T,T] / [T,dh] dots, kept in f32); each head's output
        # is written into its lane slot of o_scratch so the out-projection is a single dot.
        for h in range(H):
            qh = qkv[:, h * dh:(h + 1) * dh]                              # [T, dh] (scaled)
            kh = qkv[:, D + h * dh:D + (h + 1) * dh]
            vh = qkv[:, 2 * D + h * dh:2 * D + (h + 1) * dh]
            s = jax.lax.dot_general(qh, kh, (((1,), (1,)), ((), ())),
                                    preferred_element_type=jnp.float32) + mask   # [T, T]
            s = s - jnp.max(s, axis=-1, keepdims=True)
            p = jnp.exp(s)
            p = p * pl.reciprocal(jnp.sum(p, axis=-1, keepdims=True), approx=True)
            oh = jnp.dot(p, vh, preferred_element_type=jnp.float32)       # [T, dh]
            o_scratch[:, h * dh:(h + 1) * dh] = oh

        # single output projection: [T,D]@[D,D]
        bo = vecs_ref[l, 2:3, :D]
        attn = jnp.dot(o_scratch[...].astype(jnp.bfloat16), wo_ref[l],
                       preferred_element_type=jnp.float32) + bo           # [T, D]
        g1 = vecs_ref[l, 4:5, :D]
        be1 = vecs_ref[l, 5:6, :D]
        x = _layernorm(x + attn, g1, be1)

        # feed-forward
        b1 = vecs_ref[l, 1:2, :NH]
        b2 = vecs_ref[l, 3:4, :D]
        g2 = vecs_ref[l, 6:7, :D]
        be2 = vecs_ref[l, 7:8, :D]
        if l == nlayers - 1:
            # fold the fuzzy weight into the last LayerNorm affine (no final [T,D] multiply)
            g2 = g2 * fuzzy_scale
            be2 = be2 * fuzzy_scale
        h1 = jnp.maximum(jnp.dot(x.astype(jnp.bfloat16), w1_ref[l],
                                 preferred_element_type=jnp.float32) + b1, 0.0)
        ff = jnp.dot(h1.astype(jnp.bfloat16), w2_ref[l],
                     preferred_element_type=jnp.float32) + b2
        x = _layernorm(x + ff, g2, be2)

    if nlayers == 0:              # safeguard; fuzzy scale already folded when nlayers >= 1
        x = x * fuzzy_scale
    out_ref[...] = x


# ----------------------------------------------------------------------------
# wrapper
# ----------------------------------------------------------------------------
def fuzzy_encoder_forward(kp, tokens, features, *, nhead, nlayers):
    T = tokens.shape[0]
    ntoken, D = kp['table_scaled'].shape

    # pack the (scaled) embedding table and pe[:T] into a single VMEM slab (one DMA)
    emb_pe = jnp.concatenate([kp['table_scaled'], kp['pe'][:T]], axis=0)  # [ntoken+T, D] f32

    args = (tokens.astype(jnp.int32),        # SMEM
            features, kp['cs'], emb_pe,
            kp['wqkv'], kp['wo'], kp['w1'], kp['w2'], kp['vecs'])

    in_specs = ([pl.BlockSpec(memory_space=pltpu.MemorySpace.SMEM)]
                + [pl.BlockSpec(memory_space=pltpu.MemorySpace.VMEM)] * (len(args) - 1))

    out = pl.pallas_call(
        functools.partial(fuzzy_encoder_kernel, nlayers=nlayers, nhead=nhead, ntoken=ntoken),
        out_shape=jax.ShapeDtypeStruct((T, D), jnp.float32),
        in_specs=in_specs,
        out_specs=pl.BlockSpec(memory_space=pltpu.MemorySpace.VMEM),
        scratch_shapes=[pltpu.VMEM((T, D), jnp.float32)],     # per-layer multi-head assembly
    )(*args)
    return out.reshape(T, 1, D)               # match PyTorch [T, batch=1, ninp]


# ----------------------------------------------------------------------------
# parameters / buffers
# ----------------------------------------------------------------------------
def positional_encoding(max_len, d_model):
    position = jnp.arange(max_len, dtype=jnp.float32)[:, None]
    div_term = jnp.exp(jnp.arange(0, d_model, 2, dtype=jnp.float32)
                       * (-math.log(10000.0) / d_model))
    ang = position * div_term
    pe = jnp.zeros((max_len, d_model), jnp.float32)
    pe = pe.at[:, 0::2].set(jnp.sin(ang))
    pe = pe.at[:, 1::2].set(jnp.cos(ang))
    return pe


def causal_mask(T):
    i = jnp.arange(T)
    return jnp.where(i[:, None] >= i[None, :], 0.0, NEG_INF).astype(jnp.float32)


def init_params(key, ntoken, ninp, nhead, nhid, nlayers, rule_num, feature_num, max_len=64):
    keys = iter(jax.random.split(key, 3 + 12 * nlayers))

    def u(shape, s=0.1):
        return jax.random.uniform(next(keys), shape, jnp.float32, -s, s)

    params = {
        'embedding': u((ntoken, ninp)),                  # init_weights(): uniform(-0.1, 0.1)
        'pe': positional_encoding(max_len, ninp),
        'center': jax.random.normal(next(keys), (rule_num, feature_num), jnp.float32),
        'sigma': jax.random.uniform(next(keys), (rule_num, feature_num), jnp.float32, 0.5, 1.5),
        'layers': [],
    }
    for _ in range(nlayers):
        lp = {}
        lp['wq'] = u((ninp, ninp)); lp['bq'] = u((1, ninp))
        lp['wk'] = u((ninp, ninp)); lp['bk'] = u((1, ninp))
        lp['wv'] = u((ninp, ninp)); lp['bv'] = u((1, ninp))
        lp['wo'] = u((ninp, ninp)); lp['bo'] = u((1, ninp))
        lp['w1'] = u((ninp, nhid)); lp['b1'] = u((1, nhid))
        lp['w2'] = u((nhid, ninp)); lp['b2'] = u((1, ninp))
        for i in (1, 2):
            lp[f'g{i}'] = jnp.ones((1, ninp), jnp.float32)
            lp[f'be{i}'] = jnp.zeros((1, ninp), jnp.float32)
        params['layers'].append(lp)
    return params


def prepare_kernel_params(params, nhead):
    """Host-side weight prep:
       * wq|wk|wv concatenated into one [nlayers, D, 3D] bf16 slab (1/sqrt(dh) folded into Q),
       * wo/w1/w2 stacked per layer and cast to bf16,
       * all D-sized biases / LN params packed into ONE [nlayers, 8, VMAX] f32 slab,
       * sqrt(D) folded into the embedding table, center/sigma stacked into one array."""
    D = params['embedding'].shape[1]
    dh = D // nhead
    scale = 1.0 / math.sqrt(dh)
    nhid = params['layers'][0]['w1'].shape[1]
    vmax = max(3 * D, nhid, D)

    def pad_row(v):
        v = jnp.asarray(v, jnp.float32).reshape(-1)
        return jnp.pad(v, (0, vmax - v.shape[0]))

    wqkv, wo, w1, w2, vecs = [], [], [], [], []
    for lp in params['layers']:
        wqkv.append(jnp.concatenate([lp['wq'] * scale, lp['wk'], lp['wv']], axis=1))  # [D, 3D]
        wo.append(lp['wo'])
        w1.append(lp['w1'])
        w2.append(lp['w2'])
        bqkv = jnp.concatenate([lp['bq'].reshape(-1) * scale,
                                lp['bk'].reshape(-1), lp['bv'].reshape(-1)])          # [3D]
        rows = [pad_row(bqkv),      # row 0: bq|bk|bv (scale folded into bq)
                pad_row(lp['b1']),  # row 1: FFN bias 1
                pad_row(lp['bo']),  # row 2: attn out-proj bias
                pad_row(lp['b2']),  # row 3: FFN bias 2
                pad_row(lp['g1']), pad_row(lp['be1']),   # rows 4,5: LN1 affine
                pad_row(lp['g2']), pad_row(lp['be2'])]   # rows 6,7: LN2 affine
        vecs.append(jnp.stack(rows))                                                  # [8, vmax]

    return {
        'wqkv': jnp.stack(wqkv).astype(jnp.bfloat16),
        'wo':   jnp.stack(wo).astype(jnp.bfloat16),
        'w1':   jnp.stack(w1).astype(jnp.bfloat16),
        'w2':   jnp.stack(w2).astype(jnp.bfloat16),
        'vecs': jnp.stack(vecs),                                   # f32
        'table_scaled': params['embedding'] * math.sqrt(D),        # sqrt(D) folded
        'pe': params['pe'],
        'cs': jnp.stack([params['center'], params['sigma']]),      # [2, R, F]
    }


# ----------------------------------------------------------------------------
# pure-JAX reference (mirrors the PyTorch module, eval mode)
# ----------------------------------------------------------------------------
def _mha_ref(x, p, mask, nhead):
    D = x.shape[-1]
    dh = D // nhead
    scale = 1.0 / math.sqrt(dh)
    q = x @ p['wq'] + p['bq']
    k = x @ p['wk'] + p['bk']
    v = x @ p['wv'] + p['bv']
    heads = []
    for h in range(nhead):
        sl = slice(h * dh, (h + 1) * dh)
        s = (q[:, sl] * scale) @ k[:, sl].T + mask
        s = s - jnp.max(s, axis=-1, keepdims=True)
        pr = jnp.exp(s)
        pr = pr / jnp.sum(pr, axis=-1, keepdims=True)
        heads.append(pr @ v[:, sl])
    return jnp.concatenate(heads, axis=-1) @ p['wo'] + p['bo']


def fuzzy_encoder_reference(params, tokens, features, *, nhead):
    T = tokens.shape[0]
    D = params['embedding'].shape[1]
    # TransEncoder
    x = params['embedding'][tokens] * math.sqrt(D) + params['pe'][:T]
    mask = causal_mask(T)
    for p in params['layers']:
        sa = _mha_ref(x, p, mask, nhead)
        x = _layernorm(x + sa, p['g1'], p['be1'])
        h = jnp.maximum(x @ p['w1'] + p['b1'], 0.0)
        x = _layernorm(x + (h @ p['w2'] + p['b2']), p['g2'], p['be2'])
    enc = x.reshape(T, 1, D)
    # FuzzySystem
    delta = features - params['center']
    memb = jnp.exp(-jnp.square(delta / params['sigma']) / 2.0)
    prod = jnp.prod(memb, axis=1)
    total = jnp.sum(prod)
    prod = jnp.where(total == 0.0, prod, prod / total)
    prod = jnp.where(jnp.isnan(prod), 1.0, prod)
    out = jnp.zeros_like(enc)
    for i in range(prod.shape[0]):      # all rule encoders are the same module
        out = out + prod[i] * enc
    return out


# ----------------------------------------------------------------------------
if __name__ == "__main__":
    NTOKEN, NINP, NHEAD, NHID, NLAYERS = 32, 32, 4, 64, 2
    RULE_NUM, FEAT_NUM = 4, 8
    T = 8                                   # batch is forced to 1 by src.view(-1, 1)

    key = jax.random.PRNGKey(0)
    k_tok, k_feat, k_par = jax.random.split(key, 3)

    tokens = jax.random.randint(k_tok, (T,), 0, NTOKEN)                       # token ids
    features = jax.random.normal(k_feat, (RULE_NUM, FEAT_NUM), jnp.float32)   # fuzzy features
    params = init_params(k_par, NTOKEN, NINP, NHEAD, NHID, NLAYERS,
                         RULE_NUM, FEAT_NUM, max_len=64)
    kparams = prepare_kernel_params(params, NHEAD)

    out = fuzzy_encoder_forward(kparams, tokens, features, nhead=NHEAD, nlayers=NLAYERS)
    out = jax.block_until_ready(out)

    assert out.shape == (T, 1, NINP), out.shape
    assert bool(jnp.all(jnp.isfinite(out)))

    ref = fuzzy_encoder_reference(params, tokens, features, nhead=NHEAD)
    assert bool(jnp.allclose(out, ref, rtol=2e-2, atol=2e-2)), "mismatch vs reference"

    print("KERNEL_OK")
</pallas_src>

<mosaic_0001>
module attributes {stable_mosaic.version = 11 : i64} {
  func.func @fuzzy_encoder_kernel(%arg0: memref<8xi32, #tpu.memory_space<smem>>, %arg1: memref<4x8xf32, #tpu.memory_space<vmem>>, %arg2: memref<2x4x8xf32, #tpu.memory_space<vmem>>, %arg3: memref<40x32xf32, #tpu.memory_space<vmem>>, %arg4: memref<2x32x96xbf16, #tpu.memory_space<vmem>>, %arg5: memref<2x32x32xbf16, #tpu.memory_space<vmem>>, %arg6: memref<2x32x64xbf16, #tpu.memory_space<vmem>>, %arg7: memref<2x64x32xbf16, #tpu.memory_space<vmem>>, %arg8: memref<2x8x96xf32, #tpu.memory_space<vmem>>, %arg9: memref<8x32xf32, #tpu.memory_space<vmem>>, %arg10: memref<8x32xf32, #tpu.memory_space<vmem>>) attributes {dimension_semantics = [], scalar_prefetch = 0 : i64, scratch_operands = 1 : i64, tpu.core_type = #tpu.core_type<tc>} {
    %c0 = arith.constant 0 : index
    %c0_0 = arith.constant 0 : index
    %c0_1 = arith.constant 0 : index
    %0 = vector.load %arg2[%c0, %c0_0, %c0_1] : memref<2x4x8xf32, #tpu.memory_space<vmem>>, vector<1x4x8xf32>
    %1 = vector.shape_cast %0 : vector<1x4x8xf32> to vector<4x8xf32>
    %c1 = arith.constant 1 : index
    %c0_2 = arith.constant 0 : index
    %c0_3 = arith.constant 0 : index
    %2 = vector.load %arg2[%c1, %c0_2, %c0_3] : memref<2x4x8xf32, #tpu.memory_space<vmem>>, vector<1x4x8xf32>
    %3 = vector.shape_cast %2 : vector<1x4x8xf32> to vector<4x8xf32>
    %c0_4 = arith.constant 0 : index
    %c0_5 = arith.constant 0 : index
    %4 = vector.load %arg1[%c0_4, %c0_5] : memref<4x8xf32, #tpu.memory_space<vmem>>, vector<4x8xf32>
    %5 = arith.subf %4, %1 : vector<4x8xf32>
    %6 = arith.divf %5, %3 : vector<4x8xf32>
    %7 = arith.mulf %6, %6 : vector<4x8xf32>
    %cst = arith.constant dense<0.000000e+00> : vector<4xf32>
    %8 = vector.multi_reduction <add>, %7, %cst [1] : vector<4x8xf32> to vector<4xf32>
    %9 = vector.shape_cast %8 : vector<4xf32> to vector<4x1xf32>
    %cst_6 = arith.constant -5.000000e-01 : f32
    %10 = vector.broadcast %cst_6 : f32 to vector<4x1xf32>
    %11 = arith.mulf %10, %9 : vector<4x1xf32>
    %12 = math.exp %11 : vector<4x1xf32>
    %13 = vector.shape_cast %12 : vector<4x1xf32> to vector<1x4x1xf32>
    %cst_7 = arith.constant dense<0.000000e+00> : vector<1xf32>
    %14 = vector.multi_reduction <add>, %13, %cst_7 [1, 2] : vector<1x4x1xf32> to vector<1xf32>
    %15 = vector.shape_cast %14 : vector<1xf32> to vector<1x1x1xf32>
    %16 = vector.extract %15[0, 0, 0] : f32 from vector<1x1x1xf32>
    %cst_8 = arith.constant 0.000000e+00 : f32
    %17 = arith.cmpf oeq, %16, %cst_8 : f32
    %cst_9 = arith.constant 1.000000e+00 : f32
    %18 = arith.select %17, %cst_9, %16 : f32
    %19 = vector.broadcast %18 : f32 to vector<4x1xf32>
    %20 = arith.divf %12, %19 : vector<4x1xf32>
    %21 = arith.cmpf one, %20, %20 : vector<4x1xf32>
    %cst_10 = arith.constant 1.000000e+00 : f32
    %22 = vector.broadcast %cst_10 : f32 to vector<4x1xf32>
    %23 = arith.select %21, %22, %20 : vector<4x1xi1>, vector<4x1xf32>
    %24 = vector.shape_cast %23 : vector<4x1xf32> to vector<1x4x1xf32>
    %cst_11 = arith.constant dense<0.000000e+00> : vector<1xf32>
    %25 = vector.multi_reduction <add>, %24, %cst_11 [1, 2] : vector<1x4x1xf32> to vector<1xf32>
    %26 = vector.shape_cast %25 : vector<1xf32> to vector<1x1x1xf32>
    %27 = vector.extract %26[0, 0, 0] : f32 from vector<1x1x1xf32>
    %28 = tpu.iota {dimensions = array<i32: 0>} : vector<8x32xi32>
    %29 = tpu.iota {dimensions = array<i32: 1>} : vector<8x32xi32>
    %cst_12 = arith.constant 0.000000e+00 : f32
    %30 = vector.broadcast %cst_12 : f32 to vector<8x32xf32>
    %c0_i32 = arith.constant 0 : i32
    %31 = vector.broadcast %c0_i32 : i32 to vector<8x32xi32>
    %32 = arith.cmpi eq, %28, %31 : vector<8x32xi32>
    %c0_13 = arith.constant 0 : index
    %33 = memref.load %arg0[%c0_13] : memref<8xi32, #tpu.memory_space<smem>>
    %34 = vector.broadcast %33 : i32 to vector<8x32xi32>
    %35 = arith.cmpi eq, %29, %34 : vector<8x32xi32>
    %36 = arith.andi %32, %35 : vector<8x32xi1>
    %cst_14 = arith.constant 1.000000e+00 : f32
    %37 = vector.broadcast %cst_14 : f32 to vector<8x32xf32>
    %38 = arith.select %36, %37, %30 : vector<8x32xi1>, vector<8x32xf32>
    %c1_i32 = arith.constant 1 : i32
    %39 = vector.broadcast %c1_i32 : i32 to vector<8x32xi32>
    %40 = arith.cmpi eq, %28, %39 : vector<8x32xi32>
    %c1_15 = arith.constant 1 : index
    %41 = memref.load %arg0[%c1_15] : memref<8xi32, #tpu.memory_space<smem>>
    %42 = vector.broadcast %41 : i32 to vector<8x32xi32>
    %43 = arith.cmpi eq, %29, %42 : vector<8x32xi32>
    %44 = arith.andi %40, %43 : vector<8x32xi1>
    %cst_16 = arith.constant 1.000000e+00 : f32
    %45 = vector.broadcast %cst_16 : f32 to vector<8x32xf32>
    %46 = arith.select %44, %45, %38 : vector<8x32xi1>, vector<8x32xf32>
    %c2_i32 = arith.constant 2 : i32
    %47 = vector.broadcast %c2_i32 : i32 to vector<8x32xi32>
    %48 = arith.cmpi eq, %28, %47 : vector<8x32xi32>
    %c2 = arith.constant 2 : index
    %49 = memref.load %arg0[%c2] : memref<8xi32, #tpu.memory_space<smem>>
    %50 = vector.broadcast %49 : i32 to vector<8x32xi32>
    %51 = arith.cmpi eq, %29, %50 : vector<8x32xi32>
    %52 = arith.andi %48, %51 : vector<8x32xi1>
    %cst_17 = arith.constant 1.000000e+00 : f32
    %53 = vector.broadcast %cst_17 : f32 to vector<8x32xf32>
    %54 = arith.select %52, %53, %46 : vector<8x32xi1>, vector<8x32xf32>
    %c3_i32 = arith.constant 3 : i32
    %55 = vector.broadcast %c3_i32 : i32 to vector<8x32xi32>
    %56 = arith.cmpi eq, %28, %55 : vector<8x32xi32>
    %c3 = arith.constant 3 : index
    %57 = memref.load %arg0[%c3] : memref<8xi32, #tpu.memory_space<smem>>
    %58 = vector.broadcast %57 : i32 to vector<8x32xi32>
    %59 = arith.cmpi eq, %29, %58 : vector<8x32xi32>
    %60 = arith.andi %56, %59 : vector<8x32xi1>
    %cst_18 = arith.constant 1.000000e+00 : f32
    %61 = vector.broadcast %cst_18 : f32 to vector<8x32xf32>
    %62 = arith.select %60, %61, %54 : vector<8x32xi1>, vector<8x32xf32>
    %c4_i32 = arith.constant 4 : i32
    %63 = vector.broadcast %c4_i32 : i32 to vector<8x32xi32>
    %64 = arith.cmpi eq, %28, %63 : vector<8x32xi32>
    %c4 = arith.constant 4 : index
    %65 = memref.load %arg0[%c4] : memref<8xi32, #tpu.memory_space<smem>>
    %66 = vector.broadcast %65 : i32 to vector<8x32xi32>
    %67 = arith.cmpi eq, %29, %66 : vector<8x32xi32>
    %68 = arith.andi %64, %67 : vector<8x32xi1>
    %cst_19 = arith.constant 1.000000e+00 : f32
    %69 = vector.broadcast %cst_19 : f32 to vector<8x32xf32>
    %70 = arith.select %68, %69, %62 : vector<8x32xi1>, vector<8x32xf32>
    %c5_i32 = arith.constant 5 : i32
    %71 = vector.broadcast %c5_i32 : i32 to vector<8x32xi32>
    %72 = arith.cmpi eq, %28, %71 : vector<8x32xi32>
    %c5 = arith.constant 5 : index
    %73 = memref.load %arg0[%c5] : memref<8xi32, #tpu.memory_space<smem>>
    %74 = vector.broadcast %73 : i32 to vector<8x32xi32>
    %75 = arith.cmpi eq, %29, %74 : vector<8x32xi32>
    %76 = arith.andi %72, %75 : vector<8x32xi1>
    %cst_20 = arith.constant 1.000000e+00 : f32
    %77 = vector.broadcast %cst_20 : f32 to vector<8x32xf32>
    %78 = arith.select %76, %77, %70 : vector<8x32xi1>, vector<8x32xf32>
    %c6_i32 = arith.constant 6 : i32
    %79 = vector.broadcast %c6_i32 : i32 to vector<8x32xi32>
    %80 = arith.cmpi eq, %28, %79 : vector<8x32xi32>
    %c6 = arith.constant 6 : index
    %81 = memref.load %arg0[%c6] : memref<8xi32, #tpu.memory_space<smem>>
    %82 = vector.broadcast %81 : i32 to vector<8x32xi32>
    %83 = arith.cmpi eq, %29, %82 : vector<8x32xi32>
    %84 = arith.andi %80, %83 : vector<8x32xi1>
    %cst_21 = arith.constant 1.000000e+00 : f32
    %85 = vector.broadcast %cst_21 : f32 to vector<8x32xf32>
    %86 = arith.select %84, %85, %78 : vector<8x32xi1>, vector<8x32xf32>
    %c7_i32 = arith.constant 7 : i32
    %87 = vector.broadcast %c7_i32 : i32 to vector<8x32xi32>
    %88 = arith.cmpi eq, %28, %87 : vector<8x32xi32>
    %c7 = arith.constant 7 : index
    %89 = memref.load %arg0[%c7] : memref<8xi32, #tpu.memory_space<smem>>
    %90 = vector.broadcast %89 : i32 to vector<8x32xi32>
    %91 = arith.cmpi eq, %29, %90 : vector<8x32xi32>
    %92 = arith.andi %88, %91 : vector<8x32xi1>
    %cst_22 = arith.constant 1.000000e+00 : f32
    %93 = vector.broadcast %cst_22 : f32 to vector<8x32xf32>
    %94 = arith.select %92, %93, %86 : vector<8x32xi1>, vector<8x32xf32>
    %c0_23 = arith.constant 0 : index
    %c0_24 = arith.constant 0 : index
    %95 = vector.load %arg3[%c0_23, %c0_24] : memref<40x32xf32, #tpu.memory_space<vmem>>, vector<32x32xf32>
    %96 = arith.truncf %95 : vector<32x32xf32> to vector<32x32xbf16>
    %c32 = arith.constant 32 : index
    %c0_25 = arith.constant 0 : index
    %97 = vector.load %arg3[%c32, %c0_25] : memref<40x32xf32, #tpu.memory_space<vmem>>, vector<8x32xf32>
    %98 = arith.truncf %94 : vector<8x32xf32> to vector<8x32xbf16>
    %cst_26 = arith.constant dense<0.000000e+00> : vector<8x32xf32>
    %99 = tpu.matmul %98, %96, %cst_26 {dimension_numbers = #tpu.dot_dimension_numbers<[1], [0], [0], [1], [0, 0, 1, 1], [], []>} : vector<8x32xbf16>, vector<32x32xbf16>, vector<8x32xf32> -> vector<8x32xf32>
    %100 = arith.addf %99, %97 : vector<8x32xf32>
    %101 = tpu.iota {dimensions = array<i32: 0>} : vector<8x8xi32>
    %102 = tpu.iota {dimensions = array<i32: 1>} : vector<8x8xi32>
    %103 = arith.cmpi sge, %101, %102 : vector<8x8xi32>
    %cst_27 = arith.constant 0.000000e+00 : f32
    %cst_28 = arith.constant -1.000000e+09 : f32
    %104 = vector.broadcast %cst_27 : f32 to vector<8x8xf32>
    %105 = vector.broadcast %cst_28 : f32 to vector<8x8xf32>
    %106 = arith.select %103, %104, %105 : vector<8x8xi1>, vector<8x8xf32>
    %c0_29 = arith.constant 0 : index
    %c0_30 = arith.constant 0 : index
    %c0_31 = arith.constant 0 : index
    %107 = vector.load %arg8[%c0_29, %c0_30, %c0_31] : memref<2x8x96xf32, #tpu.memory_space<vmem>>, vector<1x1x96xf32>
    %108 = vector.shape_cast %107 : vector<1x1x96xf32> to vector<1x96xf32>
    %109 = arith.truncf %100 : vector<8x32xf32> to vector<8x32xbf16>
    %c0_32 = arith.constant 0 : index
    %c0_33 = arith.constant 0 : index
    %c0_34 = arith.constant 0 : index
    %110 = vector.load %arg4[%c0_32, %c0_33, %c0_34] : memref<2x32x96xbf16, #tpu.memory_space<vmem>>, vector<1x32x96xbf16>
    %111 = vector.shape_cast %110 : vector<1x32x96xbf16> to vector<32x96xbf16>
    %cst_35 = arith.constant dense<0.000000e+00> : vector<8x96xf32>
    %112 = tpu.matmul %109, %111, %cst_35 {dimension_numbers = #tpu.dot_dimension_numbers<[1], [0], [0], [1], [0, 0, 1, 1], [], []>} : vector<8x32xbf16>, vector<32x96xbf16>, vector<8x96xf32> -> vector<8x96xf32>
    %113 = vector.broadcast %108 : vector<1x96xf32> to vector<8x96xf32>
    %114 = arith.addf %112, %113 : vector<8x96xf32>
    %115 = vector.extract_strided_slice %114 {offsets = [0, 0], sizes = [8, 8], strides = [1, 1]} : vector<8x96xf32> to vector<8x8xf32>
    %116 = vector.extract_strided_slice %114 {offsets = [0, 32], sizes = [8, 8], strides = [1, 1]} : vector<8x96xf32> to vector<8x8xf32>
    %117 = vector.extract_strided_slice %114 {offsets = [0, 64], sizes = [8, 8], strides = [1, 1]} : vector<8x96xf32> to vector<8x8xf32>
    %cst_36 = arith.constant dense<0.000000e+00> : vector<8x8xf32>
    %118 = tpu.matmul %115, %116, %cst_36 {dimension_numbers = #tpu.dot_dimension_numbers<[1], [1], [0], [0], [0, 0, 1, 0], [], []>} : vector<8x8xf32>, vector<8x8xf32>, vector<8x8xf32> -> vector<8x8xf32>
    %119 = arith.addf %118, %106 : vector<8x8xf32>
    %cst_37 = arith.constant dense<0xFF800000> : vector<8xf32>
    %120 = vector.multi_reduction <maximumf>, %119, %cst_37 [1] : vector<8x8xf32> to vector<8xf32>
    %121 = vector.shape_cast %120 : vector<8xf32> to vector<8x1xf32>
    %122 = vector.broadcast %121 : vector<8x1xf32> to vector<8x8xf32>
    %123 = arith.subf %119, %122 : vector<8x8xf32>
    %124 = math.exp %123 : vector<8x8xf32>
    %cst_38 = arith.constant dense<0.000000e+00> : vector<8xf32>
    %125 = vector.multi_reduction <add>, %124, %cst_38 [1] : vector<8x8xf32> to vector<8xf32>
    %126 = vector.shape_cast %125 : vector<8xf32> to vector<8x1xf32>
    %127 = tpu.reciprocal %126 {approx = true} : vector<8x1xf32> -> vector<8x1xf32>
    %128 = vector.broadcast %127 : vector<8x1xf32> to vector<8x8xf32>
    %129 = arith.mulf %124, %128 : vector<8x8xf32>
    %cst_39 = arith.constant dense<0.000000e+00> : vector<8x8xf32>
    %130 = tpu.matmul %129, %117, %cst_39 {dimension_numbers = #tpu.dot_dimension_numbers<[1], [0], [0], [1], [0, 0, 1, 1], [], []>} : vector<8x8xf32>, vector<8x8xf32>, vector<8x8xf32> -> vector<8x8xf32>
    %c0_40 = arith.constant 0 : index
    %c0_41 = arith.constant 0 : index
    %131 = vector.load %arg10[%c0_40, %c0_41] : memref<8x32xf32, #tpu.memory_space<vmem>>, vector<8x8xf32>
    tpu.vector_store %arg10[%c0_40, %c0_41], %130 {strides = array<i32>} : memref<8x32xf32, #tpu.memory_space<vmem>>, vector<8x8xf32>,
    %132 = vector.extract_strided_slice %114 {offsets = [0, 8], sizes = [8, 8], strides = [1, 1]} : vector<8x96xf32> to vector<8x8xf32>
    %133 = vector.extract_strided_slice %114 {offsets = [0, 40], sizes = [8, 8], strides = [1, 1]} : vector<8x96xf32> to vector<8x8xf32>
    %134 = vector.extract_strided_slice %114 {offsets = [0, 72], sizes = [8, 8], strides = [1, 1]} : vector<8x96xf32> to vector<8x8xf32>
    %cst_42 = arith.constant dense<0.000000e+00> : vector<8x8xf32>
    %135 = tpu.matmul %132, %133, %cst_42 {dimension_numbers = #tpu.dot_dimension_numbers<[1], [1], [0], [0], [0, 0, 1, 0], [], []>} : vector<8x8xf32>, vector<8x8xf32>, vector<8x8xf32> -> vector<8x8xf32>
    %136 = arith.addf %135, %106 : vector<8x8xf32>
    %cst_43 = arith.constant dense<0xFF800000> : vector<8xf32>
    %137 = vector.multi_reduction <maximumf>, %136, %cst_43 [1] : vector<8x8xf32> to vector<8xf32>
    %138 = vector.shape_cast %137 : vector<8xf32> to vector<8x1xf32>
    %139 = vector.broadcast %138 : vector<8x1xf32> to vector<8x8xf32>
    %140 = arith.subf %136, %139 : vector<8x8xf32>
    %141 = math.exp %140 : vector<8x8xf32>
    %cst_44 = arith.constant dense<0.000000e+00> : vector<8xf32>
    %142 = vector.multi_reduction <add>, %141, %cst_44 [1] : vector<8x8xf32> to vector<8xf32>
    %143 = vector.shape_cast %142 : vector<8xf32> to vector<8x1xf32>
    %144 = tpu.reciprocal %143 {approx = true} : vector<8x1xf32> -> vector<8x1xf32>
    %145 = vector.broadcast %144 : vector<8x1xf32> to vector<8x8xf32>
    %146 = arith.mulf %141, %145 : vector<8x8xf32>
    %cst_45 = arith.constant dense<0.000000e+00> : vector<8x8xf32>
    %147 = tpu.matmul %146, %134, %cst_45 {dimension_numbers = #tpu.dot_dimension_numbers<[1], [0], [0], [1], [0, 0, 1, 1], [], []>} : vector<8x8xf32>, vector<8x8xf32>, vector<8x8xf32> -> vector<8x8xf32>
    %c0_46 = arith.constant 0 : index
    %c8 = arith.constant 8 : index
    %148 = vector.load %arg10[%c0_46, %c8] : memref<8x32xf32, #tpu.memory_space<vmem>>, vector<8x8xf32>
    tpu.vector_store %arg10[%c0_46, %c8], %147 {strides = array<i32>} : memref<8x32xf32, #tpu.memory_space<vmem>>, vector<8x8xf32>,
    %149 = vector.extract_strided_slice %114 {offsets = [0, 16], sizes = [8, 8], strides = [1, 1]} : vector<8x96xf32> to vector<8x8xf32>
    %150 = vector.extract_strided_slice %114 {offsets = [0, 48], sizes = [8, 8], strides = [1, 1]} : vector<8x96xf32> to vector<8x8xf32>
    %151 = vector.extract_strided_slice %114 {offsets = [0, 80], sizes = [8, 8], strides = [1, 1]} : vector<8x96xf32> to vector<8x8xf32>
    %cst_47 = arith.constant dense<0.000000e+00> : vector<8x8xf32>
    %152 = tpu.matmul %149, %150, %cst_47 {dimension_numbers = #tpu.dot_dimension_numbers<[1], [1], [0], [0], [0, 0, 1, 0], [], []>} : vector<8x8xf32>, vector<8x8xf32>, vector<8x8xf32> -> vector<8x8xf32>
    %153 = arith.addf %152, %106 : vector<8x8xf32>
    %cst_48 = arith.constant dense<0xFF800000> : vector<8xf32>
    %154 = vector.multi_reduction <maximumf>, %153, %cst_48 [1] : vector<8x8xf32> to vector<8xf32>
    %155 = vector.shape_cast %154 : vector<8xf32> to vector<8x1xf32>
    %156 = vector.broadcast %155 : vector<8x1xf32> to vector<8x8xf32>
    %157 = arith.subf %153, %156 : vector<8x8xf32>
    %158 = math.exp %157 : vector<8x8xf32>
    %cst_49 = arith.constant dense<0.000000e+00> : vector<8xf32>
    %159 = vector.multi_reduction <add>, %158, %cst_49 [1] : vector<8x8xf32> to vector<8xf32>
    %160 = vector.shape_cast %159 : vector<8xf32> to vector<8x1xf32>
    %161 = tpu.reciprocal %160 {approx = true} : vector<8x1xf32> -> vector<8x1xf32>
    %162 = vector.broadcast %161 : vector<8x1xf32> to vector<8x8xf32>
    %163 = arith.mulf %158, %162 : vector<8x8xf32>
    %cst_50 = arith.constant dense<0.000000e+00> : vector<8x8xf32>
    %164 = tpu.matmul %163, %151, %cst_50 {dimension_numbers = #tpu.dot_dimension_numbers<[1], [0], [0], [1], [0, 0, 1, 1], [], []>} : vector<8x8xf32>, vector<8x8xf32>, vector<8x8xf32> -> vector<8x8xf32>
    %c0_51 = arith.constant 0 : index
    %c16 = arith.constant 16 : index
    %165 = vector.load %arg10[%c0_51, %c16] : memref<8x32xf32, #tpu.memory_space<vmem>>, vector<8x8xf32>
    tpu.vector_store %arg10[%c0_51, %c16], %164 {strides = array<i32>} : memref<8x32xf32, #tpu.memory_space<vmem>>, vector<8x8xf32>,
    %166 = vector.extract_strided_slice %114 {offsets = [0, 24], sizes = [8, 8], strides = [1, 1]} : vector<8x96xf32> to vector<8x8xf32>
    %167 = vector.extract_strided_slice %114 {offsets = [0, 56], sizes = [8, 8], strides = [1, 1]} : vector<8x96xf32> to vector<8x8xf32>
    %168 = vector.extract_strided_slice %114 {offsets = [0, 88], sizes = [8, 8], strides = [1, 1]} : vector<8x96xf32> to vector<8x8xf32>
    %cst_52 = arith.constant dense<0.000000e+00> : vector<8x8xf32>
    %169 = tpu.matmul %166, %167, %cst_52 {dimension_numbers = #tpu.dot_dimension_numbers<[1], [1], [0], [0], [0, 0, 1, 0], [], []>} : vector<8x8xf32>, vector<8x8xf32>, vector<8x8xf32> -> vector<8x8xf32>
    %170 = arith.addf %169, %106 : vector<8x8xf32>
    %cst_53 = arith.constant dense<0xFF800000> : vector<8xf32>
    %171 = vector.multi_reduction <maximumf>, %170, %cst_53 [1] : vector<8x8xf32> to vector<8xf32>
    %172 = vector.shape_cast %171 : vector<8xf32> to vector<8x1xf32>
    %173 = vector.broadcast %172 : vector<8x1xf32> to vector<8x8xf32>
    %174 = arith.subf %170, %173 : vector<8x8xf32>
    %175 = math.exp %174 : vector<8x8xf32>
    %cst_54 = arith.constant dense<0.000000e+00> : vector<8xf32>
    %176 = vector.multi_reduction <add>, %175, %cst_54 [1] : vector<8x8xf32> to vector<8xf32>
    %177 = vector.shape_cast %176 : vector<8xf32> to vector<8x1xf32>
    %178 = tpu.reciprocal %177 {approx = true} : vector<8x1xf32> -> vector<8x1xf32>
    %179 = vector.broadcast %178 : vector<8x1xf32> to vector<8x8xf32>
    %180 = arith.mulf %175, %179 : vector<8x8xf32>
    %cst_55 = arith.constant dense<0.000000e+00> : vector<8x8xf32>
    %181 = tpu.matmul %180, %168, %cst_55 {dimension_numbers = #tpu.dot_dimension_numbers<[1], [0], [0], [1], [0, 0, 1, 1], [], []>} : vector<8x8xf32>, vector<8x8xf32>, vector<8x8xf32> -> vector<8x8xf32>
    %c0_56 = arith.constant 0 : index
    %c24 = arith.constant 24 : index
    %182 = vector.load %arg10[%c0_56, %c24] : memref<8x32xf32, #tpu.memory_space<vmem>>, vector<8x8xf32>
    tpu.vector_store %arg10[%c0_56, %c24], %181 {strides = array<i32>} : memref<8x32xf32, #tpu.memory_space<vmem>>, vector<8x8xf32>,
    %c0_57 = arith.constant 0 : index
    %c2_58 = arith.constant 2 : index
    %c0_59 = arith.constant 0 : index
    %183 = vector.load %arg8[%c0_57, %c2_58, %c0_59] : memref<2x8x96xf32, #tpu.memory_space<vmem>>, vector<1x1x32xf32>
    %184 = vector.shape_cast %183 : vector<1x1x32xf32> to vector<1x32xf32>
    %c0_60 = arith.constant 0 : index
    %c0_61 = arith.constant 0 : index
    %185 = vector.load %arg10[%c0_60, %c0_61] : memref<8x32xf32, #tpu.memory_space<vmem>>, vector<8x32xf32>
    %186 = arith.truncf %185 : vector<8x32xf32> to vector<8x32xbf16>
    %c0_62 = arith.constant 0 : index
    %c0_63 = arith.constant 0 : index
    %c0_64 = arith.constant 0 : index
    %187 = vector.load %arg5[%c0_62, %c0_63, %c0_64] : memref<2x32x32xbf16, #tpu.memory_space<vmem>>, vector<1x32x32xbf16>
    %188 = vector.shape_cast %187 : vector<1x32x32xbf16> to vector<32x32xbf16>
    %cst_65 = arith.constant dense<0.000000e+00> : vector<8x32xf32>
    %189 = tpu.matmul %186, %188, %cst_65 {dimension_numbers = #tpu.dot_dimension_numbers<[1], [0], [0], [1], [0, 0, 1, 1], [], []>} : vector<8x32xbf16>, vector<32x32xbf16>, vector<8x32xf32> -> vector<8x32xf32>
    %190 = vector.broadcast %184 : vector<1x32xf32> to vector<8x32xf32>
    %191 = arith.addf %189, %190 : vector<8x32xf32>
    %c0_66 = arith.constant 0 : index
    %c4_67 = arith.constant 4 : index
    %c0_68 = arith.constant 0 : index
    %192 = vector.load %arg8[%c0_66, %c4_67, %c0_68] : memref<2x8x96xf32, #tpu.memory_space<vmem>>, vector<1x1x32xf32>
    %193 = vector.shape_cast %192 : vector<1x1x32xf32> to vector<1x32xf32>
    %c0_69 = arith.constant 0 : index
    %c5_70 = arith.constant 5 : index
    %c0_71 = arith.constant 0 : index
    %194 = vector.load %arg8[%c0_69, %c5_70, %c0_71] : memref<2x8x96xf32, #tpu.memory_space<vmem>>, vector<1x1x32xf32>
    %195 = vector.shape_cast %194 : vector<1x1x32xf32> to vector<1x32xf32>
    %196 = arith.addf %100, %191 : vector<8x32xf32>
    %cst_72 = arith.constant dense<0.000000e+00> : vector<8xf32>
    %197 = vector.multi_reduction <add>, %196, %cst_72 [1] : vector<8x32xf32> to vector<8xf32>
    %198 = vector.shape_cast %197 : vector<8xf32> to vector<8x1xf32>
    %cst_73 = arith.constant 3.200000e+01 : f32
    %199 = vector.broadcast %cst_73 : f32 to vector<8x1xf32>
    %200 = arith.divf %198, %199 : vector<8x1xf32>
    %201 = vector.broadcast %200 : vector<8x1xf32> to vector<8x32xf32>
    %202 = arith.subf %196, %201 : vector<8x32xf32>
    %203 = arith.mulf %202, %202 : vector<8x32xf32>
    %cst_74 = arith.constant dense<0.000000e+00> : vector<8xf32>
    %204 = vector.multi_reduction <add>, %203, %cst_74 [1] : vector<8x32xf32> to vector<8xf32>
    %205 = vector.shape_cast %204 : vector<8xf32> to vector<8x1xf32>
    %cst_75 = arith.constant 3.200000e+01 : f32
    %206 = vector.broadcast %cst_75 : f32 to vector<8x1xf32>
    %207 = arith.divf %205, %206 : vector<8x1xf32>
    %208 = vector.broadcast %200 : vector<8x1xf32> to vector<8x32xf32>
    %209 = arith.subf %196, %208 : vector<8x32xf32>
    %cst_76 = arith.constant 9.99999974E-6 : f32
    %210 = vector.broadcast %cst_76 : f32 to vector<8x1xf32>
    %211 = arith.addf %207, %210 : vector<8x1xf32>
    %212 = math.rsqrt %211 : vector<8x1xf32>
    %213 = vector.broadcast %212 : vector<8x1xf32> to vector<8x32xf32>
    %214 = arith.mulf %209, %213 : vector<8x32xf32>
    %215 = vector.broadcast %193 : vector<1x32xf32> to vector<8x32xf32>
    %216 = arith.mulf %214, %215 : vector<8x32xf32>
    %217 = vector.broadcast %195 : vector<1x32xf32> to vector<8x32xf32>
    %218 = arith.addf %216, %217 : vector<8x32xf32>
    %c0_77 = arith.constant 0 : index
    %c1_78 = arith.constant 1 : index
    %c0_79 = arith.constant 0 : index
    %219 = vector.load %arg8[%c0_77, %c1_78, %c0_79] : memref<2x8x96xf32, #tpu.memory_space<vmem>>, vector<1x1x64xf32>
    %220 = vector.shape_cast %219 : vector<1x1x64xf32> to vector<1x64xf32>
    %c0_80 = arith.constant 0 : index
    %c3_81 = arith.constant 3 : index
    %c0_82 = arith.constant 0 : index
    %221 = vector.load %arg8[%c0_80, %c3_81, %c0_82] : memref<2x8x96xf32, #tpu.memory_space<vmem>>, vector<1x1x32xf32>
    %222 = vector.shape_cast %221 : vector<1x1x32xf32> to vector<1x32xf32>
    %c0_83 = arith.constant 0 : index
    %c6_84 = arith.constant 6 : index
    %c0_85 = arith.constant 0 : index
    %223 = vector.load %arg8[%c0_83, %c6_84, %c0_85] : memref<2x8x96xf32, #tpu.memory_space<vmem>>, vector<1x1x32xf32>
    %224 = vector.shape_cast %223 : vector<1x1x32xf32> to vector<1x32xf32>
    %c0_86 = arith.constant 0 : index
    %c7_87 = arith.constant 7 : index
    %c0_88 = arith.constant 0 : index
    %225 = vector.load %arg8[%c0_86, %c7_87, %c0_88] : memref<2x8x96xf32, #tpu.memory_space<vmem>>, vector<1x1x32xf32>
    %226 = vector.shape_cast %225 : vector<1x1x32xf32> to vector<1x32xf32>
    %227 = arith.truncf %218 : vector<8x32xf32> to vector<8x32xbf16>
    %c0_89 = arith.constant 0 : index
    %c0_90 = arith.constant 0 : index
    %c0_91 = arith.constant 0 : index
    %228 = vector.load %arg6[%c0_89, %c0_90, %c0_91] : memref<2x32x64xbf16, #tpu.memory_space<vmem>>, vector<1x32x64xbf16>
    %229 = vector.shape_cast %228 : vector<1x32x64xbf16> to vector<32x64xbf16>
    %cst_92 = arith.constant dense<0.000000e+00> : vector<8x64xf32>
    %230 = tpu.matmul %227, %229, %cst_92 {dimension_numbers = #tpu.dot_dimension_numbers<[1], [0], [0], [1], [0, 0, 1, 1], [], []>} : vector<8x32xbf16>, vector<32x64xbf16>, vector<8x64xf32> -> vector<8x64xf32>
    %231 = vector.broadcast %220 : vector<1x64xf32> to vector<8x64xf32>
    %232 = arith.addf %230, %231 : vector<8x64xf32>
    %cst_93 = arith.constant 0.000000e+00 : f32
    %233 = vector.broadcast %cst_93 : f32 to vector<8x64xf32>
    %234 = arith.maximumf %232, %233 : vector<8x64xf32>
    %235 = arith.truncf %234 : vector<8x64xf32> to vector<8x64xbf16>
    %c0_94 = arith.constant 0 : index
    %c0_95 = arith.constant 0 : index
    %c0_96 = arith.constant 0 : index
    %236 = vector.load %arg7[%c0_94, %c0_95, %c0_96] : memref<2x64x32xbf16, #tpu.memory_space<vmem>>, vector<1x64x32xbf16>
    %237 = vector.shape_cast %236 : vector<1x64x32xbf16> to vector<64x32xbf16>
    %cst_97 = arith.constant dense<0.000000e+00> : vector<8x32xf32>
    %238 = tpu.matmul %235, %237, %cst_97 {dimension_numbers = #tpu.dot_dimension_numbers<[1], [0], [0], [1], [0, 0, 1, 1], [], []>} : vector<8x64xbf16>, vector<64x32xbf16>, vector<8x32xf32> -> vector<8x32xf32>
    %239 = vector.broadcast %222 : vector<1x32xf32> to vector<8x32xf32>
    %240 = arith.addf %238, %239 : vector<8x32xf32>
    %241 = arith.addf %218, %240 : vector<8x32xf32>
    %cst_98 = arith.constant dense<0.000000e+00> : vector<8xf32>
    %242 = vector.multi_reduction <add>, %241, %cst_98 [1] : vector<8x32xf32> to vector<8xf32>
    %243 = vector.shape_cast %242 : vector<8xf32> to vector<8x1xf32>
    %cst_99 = arith.constant 3.200000e+01 : f32
    %244 = vector.broadcast %cst_99 : f32 to vector<8x1xf32>
    %245 = arith.divf %243, %244 : vector<8x1xf32>
    %246 = vector.broadcast %245 : vector<8x1xf32> to vector<8x32xf32>
    %247 = arith.subf %241, %246 : vector<8x32xf32>
    %248 = arith.mulf %247, %247 : vector<8x32xf32>
    %cst_100 = arith.constant dense<0.000000e+00> : vector<8xf32>
    %249 = vector.multi_reduction <add>, %248, %cst_100 [1] : vector<8x32xf32> to vector<8xf32>
    %250 = vector.shape_cast %249 : vector<8xf32> to vector<8x1xf32>
    %cst_101 = arith.constant 3.200000e+01 : f32
    %251 = vector.broadcast %cst_101 : f32 to vector<8x1xf32>
    %252 = arith.divf %250, %251 : vector<8x1xf32>
    %253 = vector.broadcast %245 : vector<8x1xf32> to vector<8x32xf32>
    %254 = arith.subf %241, %253 : vector<8x32xf32>
    %cst_102 = arith.constant 9.99999974E-6 : f32
    %255 = vector.broadcast %cst_102 : f32 to vector<8x1xf32>
    %256 = arith.addf %252, %255 : vector<8x1xf32>
    %257 = math.rsqrt %256 : vector<8x1xf32>
    %258 = vector.broadcast %257 : vector<8x1xf32> to vector<8x32xf32>
    %259 = arith.mulf %254, %258 : vector<8x32xf32>
    %260 = vector.broadcast %224 : vector<1x32xf32> to vector<8x32xf32>
    %261 = arith.mulf %259, %260 : vector<8x32xf32>
    %262 = vector.broadcast %226 : vector<1x32xf32> to vector<8x32xf32>
    %263 = arith.addf %261, %262 : vector<8x32xf32>
    %c1_103 = arith.constant 1 : index
    %c0_104 = arith.constant 0 : index
    %c0_105 = arith.constant 0 : index
    %264 = vector.load %arg8[%c1_103, %c0_104, %c0_105] : memref<2x8x96xf32, #tpu.memory_space<vmem>>, vector<1x1x96xf32>
    %265 = vector.shape_cast %264 : vector<1x1x96xf32> to vector<1x96xf32>
    %266 = arith.truncf %263 : vector<8x32xf32> to vector<8x32xbf16>
    %c1_106 = arith.constant 1 : index
    %c0_107 = arith.constant 0 : index
    %c0_108 = arith.constant 0 : index
    %267 = vector.load %arg4[%c1_106, %c0_107, %c0_108] : memref<2x32x96xbf16, #tpu.memory_space<vmem>>, vector<1x32x96xbf16>
    %268 = vector.shape_cast %267 : vector<1x32x96xbf16> to vector<32x96xbf16>
    %cst_109 = arith.constant dense<0.000000e+00> : vector<8x96xf32>
    %269 = tpu.matmul %266, %268, %cst_109 {dimension_numbers = #tpu.dot_dimension_numbers<[1], [0], [0], [1], [0, 0, 1, 1], [], []>} : vector<8x32xbf16>, vector<32x96xbf16>, vector<8x96xf32> -> vector<8x96xf32>
    %270 = vector.broadcast %265 : vector<1x96xf32> to vector<8x96xf32>
    %271 = arith.addf %269, %270 : vector<8x96xf32>
    %272 = vector.extract_strided_slice %271 {offsets = [0, 0], sizes = [8, 8], strides = [1, 1]} : vector<8x96xf32> to vector<8x8xf32>
    %273 = vector.extract_strided_slice %271 {offsets = [0, 32], sizes = [8, 8], strides = [1, 1]} : vector<8x96xf32> to vector<8x8xf32>
    %274 = vector.extract_strided_slice %271 {offsets = [0, 64], sizes = [8, 8], strides = [1, 1]} : vector<8x96xf32> to vector<8x8xf32>
    %cst_110 = arith.constant dense<0.000000e+00> : vector<8x8xf32>
    %275 = tpu.matmul %272, %273, %cst_110 {dimension_numbers = #tpu.dot_dimension_numbers<[1], [1], [0], [0], [0, 0, 1, 0], [], []>} : vector<8x8xf32>, vector<8x8xf32>, vector<8x8xf32> -> vector<8x8xf32>
    %276 = arith.addf %275, %106 : vector<8x8xf32>
    %cst_111 = arith.constant dense<0xFF800000> : vector<8xf32>
    %277 = vector.multi_reduction <maximumf>, %276, %cst_111 [1] : vector<8x8xf32> to vector<8xf32>
    %278 = vector.shape_cast %277 : vector<8xf32> to vector<8x1xf32>
    %279 = vector.broadcast %278 : vector<8x1xf32> to vector<8x8xf32>
    %280 = arith.subf %276, %279 : vector<8x8xf32>
    %281 = math.exp %280 : vector<8x8xf32>
    %cst_112 = arith.constant dense<0.000000e+00> : vector<8xf32>
    %282 = vector.multi_reduction <add>, %281, %cst_112 [1] : vector<8x8xf32> to vector<8xf32>
    %283 = vector.shape_cast %282 : vector<8xf32> to vector<8x1xf32>
    %284 = tpu.reciprocal %283 {approx = true} : vector<8x1xf32> -> vector<8x1xf32>
    %285 = vector.broadcast %284 : vector<8x1xf32> to vector<8x8xf32>
    %286 = arith.mulf %281, %285 : vector<8x8xf32>
    %cst_113 = arith.constant dense<0.000000e+00> : vector<8x8xf32>
    %287 = tpu.matmul %286, %274, %cst_113 {dimension_numbers = #tpu.dot_dimension_numbers<[1], [0], [0], [1], [0, 0, 1, 1], [], []>} : vector<8x8xf32>, vector<8x8xf32>, vector<8x8xf32> -> vector<8x8xf32>
    %c0_114 = arith.constant 0 : index
    %c0_115 = arith.constant 0 : index
    %288 = vector.load %arg10[%c0_114, %c0_115] : memref<8x32xf32, #tpu.memory_space<vmem>>, vector<8x8xf32>
    tpu.vector_store %arg10[%c0_114, %c0_115], %287 {strides = array<i32>} : memref<8x32xf32, #tpu.memory_space<vmem>>, vector<8x8xf32>,
    %289 = vector.extract_strided_slice %271 {offsets = [0, 8], sizes = [8, 8], strides = [1, 1]} : vector<8x96xf32> to vector<8x8xf32>
    %290 = vector.extract_strided_slice %271 {offsets = [0, 40], sizes = [8, 8], strides = [1, 1]} : vector<8x96xf32> to vector<8x8xf32>
    %291 = vector.extract_strided_slice %271 {offsets = [0, 72], sizes = [8, 8], strides = [1, 1]} : vector<8x96xf32> to vector<8x8xf32>
    %cst_116 = arith.constant dense<0.000000e+00> : vector<8x8xf32>
    %292 = tpu.matmul %289, %290, %cst_116 {dimension_numbers = #tpu.dot_dimension_numbers<[1], [1], [0], [0], [0, 0, 1, 0], [], []>} : vector<8x8xf32>, vector<8x8xf32>, vector<8x8xf32> -> vector<8x8xf32>
    %293 = arith.addf %292, %106 : vector<8x8xf32>
    %cst_117 = arith.constant dense<0xFF800000> : vector<8xf32>
    %294 = vector.multi_reduction <maximumf>, %293, %cst_117 [1] : vector<8x8xf32> to vector<8xf32>
    %295 = vector.shape_cast %294 : vector<8xf32> to vector<8x1xf32>
    %296 = vector.broadcast %295 : vector<8x1xf32> to vector<8x8xf32>
    %297 = arith.subf %293, %296 : vector<8x8xf32>
    %298 = math.exp %297 : vector<8x8xf32>
    %cst_118 = arith.constant dense<0.000000e+00> : vector<8xf32>
    %299 = vector.multi_reduction <add>, %298, %cst_118 [1] : vector<8x8xf32> to vector<8xf32>
    %300 = vector.shape_cast %299 : vector<8xf32> to vector<8x1xf32>
    %301 = tpu.reciprocal %300 {approx = true} : vector<8x1xf32> -> vector<8x1xf32>
    %302 = vector.broadcast %301 : vector<8x1xf32> to vector<8x8xf32>
    %303 = arith.mulf %298, %302 : vector<8x8xf32>
    %cst_119 = arith.constant dense<0.000000e+00> : vector<8x8xf32>
    %304 = tpu.matmul %303, %291, %cst_119 {dimension_numbers = #tpu.dot_dimension_numbers<[1], [0], [0], [1], [0, 0, 1, 1], [], []>} : vector<8x8xf32>, vector<8x8xf32>, vector<8x8xf32> -> vector<8x8xf32>
    %c0_120 = arith.constant 0 : index
    %c8_121 = arith.constant 8 : index
    %305 = vector.load %arg10[%c0_120, %c8_121] : memref<8x32xf32, #tpu.memory_space<vmem>>, vector<8x8xf32>
    tpu.vector_store %arg10[%c0_120, %c8_121], %304 {strides = array<i32>} : memref<8x32xf32, #tpu.memory_space<vmem>>, vector<8x8xf32>,
    %306 = vector.extract_strided_slice %271 {offsets = [0, 16], sizes = [8, 8], strides = [1, 1]} : vector<8x96xf32> to vector<8x8xf32>
    %307 = vector.extract_strided_slice %271 {offsets = [0, 48], sizes = [8, 8], strides = [1, 1]} : vector<8x96xf32> to vector<8x8xf32>
    %308 = vector.extract_strided_slice %271 {offsets = [0, 80], sizes = [8, 8], strides = [1, 1]} : vector<8x96xf32> to vector<8x8xf32>
    %cst_122 = arith.constant dense<0.000000e+00> : vector<8x8xf32>
    %309 = tpu.matmul %306, %307, %cst_122 {dimension_numbers = #tpu.dot_dimension_numbers<[1], [1], [0], [0], [0, 0, 1, 0], [], []>} : vector<8x8xf32>, vector<8x8xf32>, vector<8x8xf32> -> vector<8x8xf32>
    %310 = arith.addf %309, %106 : vector<8x8xf32>
    %cst_123 = arith.constant dense<0xFF800000> : vector<8xf32>
    %311 = vector.multi_reduction <maximumf>, %310, %cst_123 [1] : vector<8x8xf32> to vector<8xf32>
    %312 = vector.shape_cast %311 : vector<8xf32> to vector<8x1xf32>
    %313 = vector.broadcast %312 : vector<8x1xf32> to vector<8x8xf32>
    %314 = arith.subf %310, %313 : vector<8x8xf32>
    %315 = math.exp %314 : vector<8x8xf32>
    %cst_124 = arith.constant dense<0.000000e+00> : vector<8xf32>
    %316 = vector.multi_reduction <add>, %315, %cst_124 [1] : vector<8x8xf32> to vector<8xf32>
    %317 = vector.shape_cast %316 : vector<8xf32> to vector<8x1xf32>
    %318 = tpu.reciprocal %317 {approx = true} : vector<8x1xf32> -> vector<8x1xf32>
    %319 = vector.broadcast %318 : vector<8x1xf32> to vector<8x8xf32>
    %320 = arith.mulf %315, %319 : vector<8x8xf32>
    %cst_125 = arith.constant dense<0.000000e+00> : vector<8x8xf32>
    %321 = tpu.matmul %320, %308, %cst_125 {dimension_numbers = #tpu.dot_dimension_numbers<[1], [0], [0], [1], [0, 0, 1, 1], [], []>} : vector<8x8xf32>, vector<8x8xf32>, vector<8x8xf32> -> vector<8x8xf32>
    %c0_126 = arith.constant 0 : index
    %c16_127 = arith.constant 16 : index
    %322 = vector.load %arg10[%c0_126, %c16_127] : memref<8x32xf32, #tpu.memory_space<vmem>>, vector<8x8xf32>
    tpu.vector_store %arg10[%c0_126, %c16_127], %321 {strides = array<i32>} : memref<8x32xf32, #tpu.memory_space<vmem>>, vector<8x8xf32>,
    %323 = vector.extract_strided_slice %271 {offsets = [0, 24], sizes = [8, 8], strides = [1, 1]} : vector<8x96xf32> to vector<8x8xf32>
    %324 = vector.extract_strided_slice %271 {offsets = [0, 56], sizes = [8, 8], strides = [1, 1]} : vector<8x96xf32> to vector<8x8xf32>
    %325 = vector.extract_strided_slice %271 {offsets = [0, 88], sizes = [8, 8], strides = [1, 1]} : vector<8x96xf32> to vector<8x8xf32>
    %cst_128 = arith.constant dense<0.000000e+00> : vector<8x8xf32>
    %326 = tpu.matmul %323, %324, %cst_128 {dimension_numbers = #tpu.dot_dimension_numbers<[1], [1], [0], [0], [0, 0, 1, 0], [], []>} : vector<8x8xf32>, vector<8x8xf32>, vector<8x8xf32> -> vector<8x8xf32>
    %327 = arith.addf %326, %106 : vector<8x8xf32>
    %cst_129 = arith.constant dense<0xFF800000> : vector<8xf32>
    %328 = vector.multi_reduction <maximumf>, %327, %cst_129 [1] : vector<8x8xf32> to vector<8xf32>
    %329 = vector.shape_cast %328 : vector<8xf32> to vector<8x1xf32>
    %330 = vector.broadcast %329 : vector<8x1xf32> to vector<8x8xf32>
    %331 = arith.subf %327, %330 : vector<8x8xf32>
    %332 = math.exp %331 : vector<8x8xf32>
    %cst_130 = arith.constant dense<0.000000e+00> : vector<8xf32>
    %333 = vector.multi_reduction <add>, %332, %cst_130 [1] : vector<8x8xf32> to vector<8xf32>
    %334 = vector.shape_cast %333 : vector<8xf32> to vector<8x1xf32>
    %335 = tpu.reciprocal %334 {approx = true} : vector<8x1xf32> -> vector<8x1xf32>
    %336 = vector.broadcast %335 : vector<8x1xf32> to vector<8x8xf32>
    %337 = arith.mulf %332, %336 : vector<8x8xf32>
    %cst_131 = arith.constant dense<0.000000e+00> : vector<8x8xf32>
    %338 = tpu.matmul %337, %325, %cst_131 {dimension_numbers = #tpu.dot_dimension_numbers<[1], [0], [0], [1], [0, 0, 1, 1], [], []>} : vector<8x8xf32>, vector<8x8xf32>, vector<8x8xf32> -> vector<8x8xf32>
    %c0_132 = arith.constant 0 : index
    %c24_133 = arith.constant 24 : index
    %339 = vector.load %arg10[%c0_132, %c24_133] : memref<8x32xf32, #tpu.memory_space<vmem>>, vector<8x8xf32>
    tpu.vector_store %arg10[%c0_132, %c24_133], %338 {strides = array<i32>} : memref<8x32xf32, #tpu.memory_space<vmem>>, vector<8x8xf32>,
    %c1_134 = arith.constant 1 : index
    %c2_135 = arith.constant 2 : index
    %c0_136 = arith.constant 0 : index
    %340 = vector.load %arg8[%c1_134, %c2_135, %c0_136] : memref<2x8x96xf32, #tpu.memory_space<vmem>>, vector<1x1x32xf32>
    %341 = vector.shape_cast %340 : vector<1x1x32xf32> to vector<1x32xf32>
    %c0_137 = arith.constant 0 : index
    %c0_138 = arith.constant 0 : index
    %342 = vector.load %arg10[%c0_137, %c0_138] : memref<8x32xf32, #tpu.memory_space<vmem>>, vector<8x32xf32>
    %343 = arith.truncf %342 : vector<8x32xf32> to vector<8x32xbf16>
    %c1_139 = arith.constant 1 : index
    %c0_140 = arith.constant 0 : index
    %c0_141 = arith.constant 0 : index
    %344 = vector.load %arg5[%c1_139, %c0_140, %c0_141] : memref<2x32x32xbf16, #tpu.memory_space<vmem>>, vector<1x32x32xbf16>
    %345 = vector.shape_cast %344 : vector<1x32x32xbf16> to vector<32x32xbf16>
    %cst_142 = arith.constant dense<0.000000e+00> : vector<8x32xf32>
    %346 = tpu.matmul %343, %345, %cst_142 {dimension_numbers = #tpu.dot_dimension_numbers<[1], [0], [0], [1], [0, 0, 1, 1], [], []>} : vector<8x32xbf16>, vector<32x32xbf16>, vector<8x32xf32> -> vector<8x32xf32>
    %347 = vector.broadcast %341 : vector<1x32xf32> to vector<8x32xf32>
    %348 = arith.addf %346, %347 : vector<8x32xf32>
    %c1_143 = arith.constant 1 : index
    %c4_144 = arith.constant 4 : index
    %c0_145 = arith.constant 0 : index
    %349 = vector.load %arg8[%c1_143, %c4_144, %c0_145] : memref<2x8x96xf32, #tpu.memory_space<vmem>>, vector<1x1x32xf32>
    %350 = vector.shape_cast %349 : vector<1x1x32xf32> to vector<1x32xf32>
    %c1_146 = arith.constant 1 : index
    %c5_147 = arith.constant 5 : index
    %c0_148 = arith.constant 0 : index
    %351 = vector.load %arg8[%c1_146, %c5_147, %c0_148] : memref<2x8x96xf32, #tpu.memory_space<vmem>>, vector<1x1x32xf32>
    %352 = vector.shape_cast %351 : vector<1x1x32xf32> to vector<1x32xf32>
    %353 = arith.addf %263, %348 : vector<8x32xf32>
    %cst_149 = arith.constant dense<0.000000e+00> : vector<8xf32>
    %354 = vector.multi_reduction <add>, %353, %cst_149 [1] : vector<8x32xf32> to vector<8xf32>
    %355 = vector.shape_cast %354 : vector<8xf32> to vector<8x1xf32>
    %cst_150 = arith.constant 3.200000e+01 : f32
    %356 = vector.broadcast %cst_150 : f32 to vector<8x1xf32>
    %357 = arith.divf %355, %356 : vector<8x1xf32>
    %358 = vector.broadcast %357 : vector<8x1xf32> to vector<8x32xf32>
    %359 = arith.subf %353, %358 : vector<8x32xf32>
    %360 = arith.mulf %359, %359 : vector<8x32xf32>
    %cst_151 = arith.constant dense<0.000000e+00> : vector<8xf32>
    %361 = vector.multi_reduction <add>, %360, %cst_151 [1] : vector<8x32xf32> to vector<8xf32>
    %362 = vector.shape_cast %361 : vector<8xf32> to vector<8x1xf32>
    %cst_152 = arith.constant 3.200000e+01 : f32
    %363 = vector.broadcast %cst_152 : f32 to vector<8x1xf32>
    %364 = arith.divf %362, %363 : vector<8x1xf32>
    %365 = vector.broadcast %357 : vector<8x1xf32> to vector<8x32xf32>
    %366 = arith.subf %353, %365 : vector<8x32xf32>
    %cst_153 = arith.constant 9.99999974E-6 : f32
    %367 = vector.broadcast %cst_153 : f32 to vector<8x1xf32>
    %368 = arith.addf %364, %367 : vector<8x1xf32>
    %369 = math.rsqrt %368 : vector<8x1xf32>
    %370 = vector.broadcast %369 : vector<8x1xf32> to vector<8x32xf32>
    %371 = arith.mulf %366, %370 : vector<8x32xf32>
    %372 = vector.broadcast %350 : vector<1x32xf32> to vector<8x32xf32>
    %373 = arith.mulf %371, %372 : vector<8x32xf32>
    %374 = vector.broadcast %352 : vector<1x32xf32> to vector<8x32xf32>
    %375 = arith.addf %373, %374 : vector<8x32xf32>
    %c1_154 = arith.constant 1 : index
    %c1_155 = arith.constant 1 : index
    %c0_156 = arith.constant 0 : index
    %376 = vector.load %arg8[%c1_154, %c1_155, %c0_156] : memref<2x8x96xf32, #tpu.memory_space<vmem>>, vector<1x1x64xf32>
    %377 = vector.shape_cast %376 : vector<1x1x64xf32> to vector<1x64xf32>
    %c1_157 = arith.constant 1 : index
    %c3_158 = arith.constant 3 : index
    %c0_159 = arith.constant 0 : index
    %378 = vector.load %arg8[%c1_157, %c3_158, %c0_159] : memref<2x8x96xf32, #tpu.memory_space<vmem>>, vector<1x1x32xf32>
    %379 = vector.shape_cast %378 : vector<1x1x32xf32> to vector<1x32xf32>
    %c1_160 = arith.constant 1 : index
    %c6_161 = arith.constant 6 : index
    %c0_162 = arith.constant 0 : index
    %380 = vector.load %arg8[%c1_160, %c6_161, %c0_162] : memref<2x8x96xf32, #tpu.memory_space<vmem>>, vector<1x1x32xf32>
    %381 = vector.shape_cast %380 : vector<1x1x32xf32> to vector<1x32xf32>
    %c1_163 = arith.constant 1 : index
    %c7_164 = arith.constant 7 : index
    %c0_165 = arith.constant 0 : index
    %382 = vector.load %arg8[%c1_163, %c7_164, %c0_165] : memref<2x8x96xf32, #tpu.memory_space<vmem>>, vector<1x1x32xf32>
    %383 = vector.shape_cast %382 : vector<1x1x32xf32> to vector<1x32xf32>
    %384 = vector.broadcast %27 : f32 to vector<1x32xf32>
    %385 = arith.mulf %381, %384 : vector<1x32xf32>
    %386 = vector.broadcast %27 : f32 to vector<1x32xf32>
    %387 = arith.mulf %383, %386 : vector<1x32xf32>
    %388 = arith.truncf %375 : vector<8x32xf32> to vector<8x32xbf16>
    %c1_166 = arith.constant 1 : index
    %c0_167 = arith.constant 0 : index
    %c0_168 = arith.constant 0 : index
    %389 = vector.load %arg6[%c1_166, %c0_167, %c0_168] : memref<2x32x64xbf16, #tpu.memory_space<vmem>>, vector<1x32x64xbf16>
    %390 = vector.shape_cast %389 : vector<1x32x64xbf16> to vector<32x64xbf16>
    %cst_169 = arith.constant dense<0.000000e+00> : vector<8x64xf32>
    %391 = tpu.matmul %388, %390, %cst_169 {dimension_numbers = #tpu.dot_dimension_numbers<[1], [0], [0], [1], [0, 0, 1, 1], [], []>} : vector<8x32xbf16>, vector<32x64xbf16>, vector<8x64xf32> -> vector<8x64xf32>
    %392 = vector.broadcast %377 : vector<1x64xf32> to vector<8x64xf32>
    %393 = arith.addf %391, %392 : vector<8x64xf32>
    %cst_170 = arith.constant 0.000000e+00 : f32
    %394 = vector.broadcast %cst_170 : f32 to vector<8x64xf32>
    %395 = arith.maximumf %393, %394 : vector<8x64xf32>
    %396 = arith.truncf %395 : vector<8x64xf32> to vector<8x64xbf16>
    %c1_171 = arith.constant 1 : index
    %c0_172 = arith.constant 0 : index
    %c0_173 = arith.constant 0 : index
    %397 = vector.load %arg7[%c1_171, %c0_172, %c0_173] : memref<2x64x32xbf16, #tpu.memory_space<vmem>>, vector<1x64x32xbf16>
    %398 = vector.shape_cast %397 : vector<1x64x32xbf16> to vector<64x32xbf16>
    %cst_174 = arith.constant dense<0.000000e+00> : vector<8x32xf32>
    %399 = tpu.matmul %396, %398, %cst_174 {dimension_numbers = #tpu.dot_dimension_numbers<[1], [0], [0], [1], [0, 0, 1, 1], [], []>} : vector<8x64xbf16>, vector<64x32xbf16>, vector<8x32xf32> -> vector<8x32xf32>
    %400 = vector.broadcast %379 : vector<1x32xf32> to vector<8x32xf32>
    %401 = arith.addf %399, %400 : vector<8x32xf32>
    %402 = arith.addf %375, %401 : vector<8x32xf32>
    %cst_175 = arith.constant dense<0.000000e+00> : vector<8xf32>
    %403 = vector.multi_reduction <add>, %402, %cst_175 [1] : vector<8x32xf32> to vector<8xf32>
    %404 = vector.shape_cast %403 : vector<8xf32> to vector<8x1xf32>
    %cst_176 = arith.constant 3.200000e+01 : f32
    %405 = vector.broadcast %cst_176 : f32 to vector<8x1xf32>
    %406 = arith.divf %404, %405 : vector<8x1xf32>
    %407 = vector.broadcast %406 : vector<8x1xf32> to vector<8x32xf32>
    %408 = arith.subf %402, %407 : vector<8x32xf32>
    %409 = arith.mulf %408, %408 : vector<8x32xf32>
    %cst_177 = arith.constant dense<0.000000e+00> : vector<8xf32>
    %410 = vector.multi_reduction <add>, %409, %cst_177 [1] : vector<8x32xf32> to vector<8xf32>
    %411 = vector.shape_cast %410 : vector<8xf32> to vector<8x1xf32>
    %cst_178 = arith.constant 3.200000e+01 : f32
    %412 = vector.broadcast %cst_178 : f32 to vector<8x1xf32>
    %413 = arith.divf %411, %412 : vector<8x1xf32>
    %414 = vector.broadcast %406 : vector<8x1xf32> to vector<8x32xf32>
    %415 = arith.subf %402, %414 : vector<8x32xf32>
    %cst_179 = arith.constant 9.99999974E-6 : f32
    %416 = vector.broadcast %cst_179 : f32 to vector<8x1xf32>
    %417 = arith.addf %413, %416 : vector<8x1xf32>
    %418 = math.rsqrt %417 : vector<8x1xf32>
    %419 = vector.broadcast %418 : vector<8x1xf32> to vector<8x32xf32>
    %420 = arith.mulf %415, %419 : vector<8x32xf32>
    %421 = vector.broadcast %385 : vector<1x32xf32> to vector<8x32xf32>
    %422 = arith.mulf %420, %421 : vector<8x32xf32>
    %423 = vector.broadcast %387 : vector<1x32xf32> to vector<8x32xf32>
    %424 = arith.addf %422, %423 : vector<8x32xf32>
    %c0_180 = arith.constant 0 : index
    %c0_181 = arith.constant 0 : index
    %425 = vector.load %arg9[%c0_180, %c0_181] : memref<8x32xf32, #tpu.memory_space<vmem>>, vector<8x32xf32>
    tpu.vector_store %arg9[%c0_180, %c0_181], %424 {strides = array<i32>} : memref<8x32xf32, #tpu.memory_space<vmem>>, vector<8x32xf32>,
    return
  }
}

</mosaic_0001>

<bundles_post_ra>
// kernel: tpu_custom_call.1
= control target key start
LH: loop header
LB: loop body
LE: loop exit
PB: predicated region body
PF: predicated region fallthrough
CT: control target
= control target key end

     0   :  { %14 = vsyncpa [#allocation5], 0  ;;  %s3173_s0 = inlined_call_operand.vmem [shape: s32[8], index: 0, kind: input, shape index: {}]   ;;  %s3174_s1 = inlined_call_operand.vmem [shape: f32[4,8], index: 1, kind: input, shape index: {}]   ;;  %s3175_s2 = inlined_call_operand.vmem [shape: f32[2,4,8], index: 2, kind: input, shape index: {}]   ;;  %s3176_s3 = inlined_call_operand.vmem [shape: f32[40,32], index: 3, kind: input, shape index: {}]   ;;  %s3177_s4 = inlined_call_operand.vmem [shape: bf16[2,32,96], index: 4, kind: input, shape index: {}]   ;;  %s3178_s5 = inlined_call_operand.vmem [shape: bf16[2,32,32], index: 5, kind: input, shape index: {}]   ;;  %s3179_s6 = inlined_call_operand.vmem [shape: bf16[2,32,64], index: 6, kind: input, shape index: {}]   ;;  %s3180_s7 = inlined_call_operand.vmem [shape: bf16[2,64,32], index: 7, kind: input, shape index: {}]   ;;  %s3181_s8 = inlined_call_operand.vmem [shape: f32[2,8,96], index: 8, kind: input, shape index: {}]   ;;  %s3182_s9 = inlined_call_operand.hbm [shape: f32[8,32], index: 9, kind: output, shape index: {}]  }
   0x1   :  { %15 = vsyncpa [#allocation4], 0  ;;  %s22_s11 = sshll.u32 %s3173_s0, 4  ;;  %s23_s11 = int_to_ptr.vmem [resolvable:$true] %s22_s11 }
   0x2   :  { %s2651_s12 = scalar_lea.vmem %s23_s11, 16  ;;  %p2656_p1 = scmp.lt.s32.totalorder %s23_s11, %s23_s11 }
   0x3   :  { %p2652_p0 = scmp.ne.s32.totalorder %s23_s11, %s2651_s12  ;;  %p2657_p2 = scmp.lt.s32.totalorder %s2651_s12, %s2651_s12 }
   0x5   :  { %p2658_p3 = por %p2657_p2, %p2656_p1 }
   0x7   :  { %p2659_p4 = pnand %p2658_p3, %p2652_p0 }
   0x9   :  { %2662 = shalt.err (!%p2659_p4)
}
   0xa   :  { %s2689_s13 = smov [#allocation3]  }
   0xb   :  { %25 = dma.vmem_to_smem %s23_s11, 16, %s2689_s13, [#allocation5]  }
   0xc   :  { %2685 = dma.done.wait [#allocation5], 16  }
   0xd   :  { %2686 = vsyncadd [#allocation5], 4294967280 }
   0xe   :  { %45 = sfence }
   0xf   :  { %v142_v0 = vld [vmem:[%s3176_s3] sm:$0xff]  ;;  %v143_v1 = vld [vmem:[%s3176_s3 + $0x8] sm:$0xff]  ;;  %v144_v2 = vld [vmem:[%s3176_s3 + $0x10] sm:$0xff]  ;;  %v90_v3 = vlaneseq  ;;  %v2690_v4 = vmov 0.0   ;;  %vm3183_vm0 = vmmov 0   ;;  %s95_s21 = sld [smem:[#allocation3]] }
  0x10   :  { %2402 = vmatprep.subr.bf16.mxu1 %v2690_v4  ;;  %v146_v5 = vpack.c.bf16 %v143_v1, %v142_v0  ;;  %v145_v6 = vld [vmem:[%s3176_s3 + $0x18] sm:$0xff]  ;;  %2406 = vmatprep.mubr.msk.bf16.mxu1 %vm3183_vm0, %v2690_v4  ;;  %s2237_s22 = sld [smem:[#allocation3 + $0x1]]  ;;  %s2238_s23 = sld [smem:[#allocation3 + $0x2]]  ;;  %v2585_v26 = vld [vmem:[%s3177_s4] sm:$0xff]   ;;  %v2586_v28 = vld [vmem:[%s3177_s4 + $0x8] sm:$0xff]  }
  0x11   :  { %v2776_v7 = vshrl.u32 %v90_v3, 7  ;;  %s2239_s24 = sld [smem:[#allocation3 + $0x3]]  ;;  %2418 = vmatprep.subr.mxu0 %v2690_v4  ;;  %2420 = vmatprep.mubr.msk.f32.mxu0 %vm3183_vm0, %v2690_v4  ;;  %v147_v8 = vpack.c.bf16 %v145_v6, %v144_v2  ;;  %s2240_s25 = sld [smem:[#allocation3 + $0x4]]  ;;  %v2782_v9 = vand.u32 127, %v90_v3  ;;  %v148_v29 = vld [vmem:[%s3176_s3 + $0x20] sm:$0xff] }
  0x12   :  { %2403 = vmatpush3.bf16.msra.mxu1 %v146_v5  ;;  %s2241_s26 = sld [smem:[#allocation3 + $0x5]]  ;;  %s2784_s27 = sld [smem:[#allocation3 + $0x6]]  ;;  %v2245_v36 = vld [vmem:[%s3181_s8] ss:$0 sm:$0xff]  ;;  %v2699_v49 = vmov -1e+09  }
  0x13   :  { %2404 = vmatprep.subr.bf16.mxu1 %v2690_v4  ;;  %s2786_s28 = sld [smem:[#allocation3 + $0x7]]  ;;  %vm94_vm1 = vcmp.eq.s32.totalorder %v2776_v7, 0  ;;  %vm100_vm2 = vcmp.eq.s32.totalorder %v2776_v7, 1  ;;  %vm106_vm3 = vcmp.eq.s32.totalorder %v2776_v7, 2  ;;  %vm112_vm4 = vcmp.eq.s32.totalorder %v2776_v7, 3  ;;  %s2692_s3 = smov 120  }
  0x14   :  { %vm118_vm11 = vcmp.eq.s32.totalorder %v2776_v7, 4  ;;  %vm124_vm14 = vcmp.eq.s32.totalorder %v2776_v7, 5  ;;  %s2693_s16 = smov 96   ;;  %s2694_s17 = smov 80  }
  0x15   :  { %v96_v10 = vstv %s95_s21  ;;  %s2695_s0 = smov 88   ;;  %s2696_s18 = smov 72  }
  0x16   :  { %2405 = vmatpush3.bf16.msra.mxu1 %v147_v8  ;;  %v102_v11 = vstv %s2237_s22  ;;  %vm97_vm5 = vcmp.eq.s32.totalorder %v2782_v9, %v96_v10  ;;  %v108_v12 = vstv %s2238_s23  ;;  %s2697_s19 = smov 112   ;;  %s2698_s20 = smov 104  }
  0x17   :  { %vm103_vm6 = vcmp.eq.s32.totalorder %v2782_v9, %v102_v11  ;;  %v114_v13 = vstv %s2239_s24  ;;  %2410 = vmatprep.subr.bf16.mxu1 %v2690_v4  ;;  %vm98_vm7 = vmand %vm94_vm1, %vm97_vm5  ;;  %vm109_vm8 = vcmp.eq.s32.totalorder %v2782_v9, %v108_v12  ;;  %v120_v14 = vstv %s2240_s25  ;;  %s2700_s21 = smov 56   ;;  %s2701_s22 = smov 64  }
  0x18   :  { %vm115_vm9 = vcmp.eq.s32.totalorder %v2782_v9, %v114_v13  ;;  %v126_v15 = vstv %s2241_s26  ;;  %v99_v16 = vsel %vm98_vm7, 1.0, %v2690_v4  ;;  %vm104_vm10 = vmand %vm100_vm2, %vm103_vm6  ;;  %vm121_vm12 = vcmp.eq.s32.totalorder %v2782_v9, %v120_v14  ;;  %s2702_s23 = smov 48   ;;  %s2703_s24 = smov 40  }
  0x19   :  { %v132_v17 = vstv %s2784_s27  ;;  %v105_v18 = vsel %vm104_vm10, 1.0, %v99_v16  ;;  %vm110_vm13 = vmand %vm106_vm3, %vm109_vm8  ;;  %vm127_vm15 = vcmp.eq.s32.totalorder %v2782_v9, %v126_v15  ;;  %v138_v19 = vstv %s2786_s28  ;;  %s2704_s25 = smov 8   ;;  %s2705_s30 = smov 16  }
  0x1a   :  { %v111_v20 = vsel %vm110_vm13, 1.0, %v105_v18  ;;  %vm116_vm1 = vmand %vm112_vm4, %vm115_vm9  ;;  %vm130_vm2 = vcmp.eq.s32.totalorder %v2776_v7, 6  ;;  %vm133_vm5 = vcmp.eq.s32.totalorder %v2782_v9, %v132_v17  ;;  %vm136_vm7 = vcmp.eq.s32.totalorder %v2776_v7, 7  ;;  %s2706_s10 = smov 24  }
  0x1b   :  { %v117_v21 = vsel %vm116_vm1, 1.0, %v111_v20  ;;  %vm122_vm6 = vmand %vm118_vm11, %vm121_vm12  ;;  %vm139_vm10 = vcmp.eq.s32.totalorder %v2782_v9, %v138_v19  ;;  %vm150_vm13 = vcmask 261120   ;;  %vm3185_vm4 = vmmov 0  }
  0x1c   :  { %v123_v22 = vsel %vm122_vm6, 1.0, %v117_v21  ;;  %vm128_vm3 = vmand %vm124_vm14, %vm127_vm15  ;;  %vm194_vm9 = vcmp.ge.s32.totalorder %v2776_v7, %v2782_v9  ;;  %vm596_vm11 = vcmask 130112   ;;  %vm767_vm12 = vcmask 195712  }
  0x1d   :  { %v129_v23 = vsel %vm128_vm3, 1.0, %v123_v22  ;;  %vm134_vm8 = vmand %vm130_vm2, %vm133_vm5  ;;  %v2877_v50 = vsel %vm194_vm9, 0.0, %v2699_v49  ;;  %vm938_vm14 = vcmask 261312   ;;  %vm1139_vm15 = vcmask 523264  }
  0x1e   :  { %v135_v24 = vsel %vm134_vm8, 1.0, %v129_v23  ;;  %vm140_vm0 = vmand %vm136_vm7, %vm139_vm10  ;;  %vm55_vm1 = vcmask 60416   ;;  %vm62_vm2 = vcmask 3072  }
  0x1f   :  { %v141_v25 = vsel %vm140_vm0, 1.0, %v135_v24  ;;  %vm264_vm0 = vcmask 64512  }
  0x20   :  { %v149_v27 = vpack.c.bf16 %v141_v25, %v141_v25 }
  0x22   :  { %2407 = vmatmul.mubr.msk.bf16.vlgmr.msra.gmra.mrb[0].mxu1 %vm150_vm13, %v149_v27 }
  0x23   :  { %2411 = vmatpush3.bf16.msra.mxu1 %v2585_v26  ;;  %2414 = vmatprep.mubr.msk.bf16.mxu1 %vm3185_vm4, %v2690_v4 }
  0x24   :  { %2412 = vmatprep.subr.bf16.mxu1 %v2690_v4 }
  0x27   :  { %2413 = vmatpush3.bf16.msra.mxu1 %v2586_v28 }
  0x28   :  { %2423 = vmatprep.subr.mxu1 %v2690_v4 }
  0xf5   :  { %v188_v30 = vpop.f32.mrb[0].mxu1 }
  0xf6   :  { %v2828_v31 = vadd.f32 %v188_v30, %v148_v29  ;;  %v2408_v32 = vpop.f32.mrb[1].mxu1 }
  0xf7   :  { %v191_v33 = vpop.f32.mrb[2].mxu1 }
  0xf8   :  { %v197_v34 = vpack.c.bf16 %v2828_v31, %v2828_v31  ;;  %v2409_v35 = vpop.f32.mrb[3].mxu1 }
  0xfa   :  { %2415 = vmatmul.mubr.msk.bf16.vlgmr.msra.gmra.mrb[4].mxu1 %vm150_vm13, %v197_v34 }
  0xfb   :  { %2425 = vmatprep.mubr.msk.f32.mxu1 %vm3185_vm4, %v2690_v4 }
 0x1cd   :  { %v255_v37 = vpop.f32.mrb[4].mxu1 }
 0x1ce   :  { %v2838_v38 = vadd.f32 %v2245_v36, %v255_v37  ;;  %v2416_v39 = vpop.f32.mrb[5].mxu1 }
 0x1cf   :  { %v258_v40 = vpop.f32.mrb[6].mxu1 }
 0x1d0   :  { %427 = vrot.lane.b32.xlu1 %v2838_v38, %s2692_s3  ;;  %262 = vrot.lane.b32.xlu0 %v2838_v38, %s2693_s16  ;;  %v2417_v41 = vpop.f32.mrb[7].mxu1 }
 0x1d4   :  { %600 = vrot.lane.b32.xlu1 %v2838_v38, %s2694_s17  ;;  %429 = vrot.lane.b32.xlu0 %v2838_v38, %s2695_s0 }
 0x1d8   :  { %771 = vrot.lane.b32.xlu1 %v2838_v38, %s2696_s18  ;;  %598 = vrot.lane.b32.xlu0 %v2838_v38, %s2697_s19 }
 0x1dc   :  { %769 = vrot.lane.b32.xlu0 %v2838_v38, %s2698_s20 }
 0x242   :  { %v428_v42 = vpop.permute.xlu1 %427  ;;  %v263_v43 = vpop.permute.xlu0 %262 }
 0x243   :  { %2419 = vmatpush3.xpose.msk.msra.mxu0 %vm264_vm0, %v263_v43 }
 0x244   :  { %2428 = vmatprep.subr.mxu0 %v2690_v4 }
 0x246   :  { %2421 = vmatmul.mubr.msk.f32.vlgmr.msra.gmra.mrb[0].mxu0 %vm264_vm0, %v2838_v38  ;;  %v430_v44 = vpop.permute.xlu0 %429  ;;  %v601_v45 = vpop.permute.xlu1 %600 }
 0x247   :  { %2429 = vmatpush3.xpose.msk.msra.mxu0 %vm264_vm0, %v430_v44  ;;  %2430 = vmatprep.mubr.msk.f32.mxu0 %vm3185_vm4, %v2690_v4 }
 0x248   :  { %2438 = vmatprep.subr.mxu0 %v2690_v4 }
 0x24a   :  { %2431 = vmatmul.mubr.msk.f32.vlgmr.msra.gmra.mrb[2].mxu0 %vm264_vm0, %v428_v42  ;;  %v599_v46 = vpop.permute.xlu0 %598  ;;  %v772_v47 = vpop.permute.xlu1 %771 }
 0x24b   :  { %2439 = vmatpush3.xpose.msk.msra.mxu0 %vm264_vm0, %v601_v45  ;;  %2440 = vmatprep.mubr.msk.f32.mxu0 %vm3185_vm4, %v2690_v4 }
 0x24c   :  { %2448 = vmatprep.subr.mxu0 %v2690_v4 }
 0x24e   :  { %2441 = vmatmul.mubr.msk.f32.vlgmr.msra.gmra.mrb[4].mxu0 %vm264_vm0, %v599_v46  ;;  %v770_v48 = vpop.permute.xlu0 %769  ;;  %v2587_v46 = vld [vmem:[%s3178_s5] sm:$0xff]  }
 0x24f   :  { %2449 = vmatpush3.xpose.msk.msra.mxu0 %vm264_vm0, %v772_v47  ;;  %2450 = vmatprep.mubr.msk.f32.mxu0 %vm3185_vm4, %v2690_v4  ;;  %v2588_v47 = vld [vmem:[%s3178_s5 + $0x8] sm:$0xff]  }
 0x250   :  { %2458 = vmatprep.subr.bf16.mxu0 %v2690_v4 }
 0x252   :  { %2451 = vmatmul.mubr.msk.f32.vlgmr.msra.gmra.mrb[6].mxu0 %vm264_vm0, %v770_v48 }
 0x253   :  { %2462 = vmatprep.mubr.msk.bf16.mxu0 %vm3185_vm4, %v2690_v4  ;;  %2459 = vmatpush3.bf16.msra.mxu0 %v2587_v46  ;;  %v2595_v46 = vld [vmem:[%s3177_s4 + $0x10] sm:$0xff]  }
 0x254   :  { %2460 = vmatprep.subr.bf16.mxu0 %v2690_v4 }
 0x257   :  { %2461 = vmatpush3.bf16.msra.mxu0 %v2588_v47  ;;  %v2596_v47 = vld [vmem:[%s3177_s4 + $0x18] sm:$0xff]  }
 0x258   :  { %2474 = vmatprep.subr.bf16.mxu0 %v2690_v4 }
 0x319   :  { %v335_v51 = vpop.f32.mrb[0].mxu0 }
 0x31a   :  { %v336_v52 = vadd.f32 %v335_v51, %v2877_v50  ;;  %v2422_v53 = vpop.f32.mrb[1].mxu0 }
 0x31c   :  { %v339_v54 = vsel %vm264_vm0, %v336_v52, -inf }
 0x31d   :  { %340 = vmax.xlane.f32.xlu1 %v339_v54  ;;  %v501_v55 = vpop.f32.mrb[2].mxu0 }
 0x31e   :  { %v502_v56 = vadd.f32 %v501_v55, %v2877_v50  ;;  %v2432_v57 = vpop.f32.mrb[3].mxu0 }
 0x320   :  { %v505_v58 = vsel %vm264_vm0, %v502_v56, -inf }
 0x321   :  { %506 = vmax.xlane.f32.xlu0 %v505_v58  ;;  %v672_v59 = vpop.f32.mrb[4].mxu0  ;;  %v2261_v58 = vld [vmem:[%s3181_s8 + $0x2] ss:$0 sm:$0xff] }
 0x322   :  { %v673_v60 = vadd.f32 %v672_v59, %v2877_v50  ;;  %v2442_v61 = vpop.f32.mrb[5].mxu0 }
 0x324   :  { %v676_v62 = vsel %vm264_vm0, %v673_v60, -inf }
 0x325   :  { %677 = vmax.xlane.f32.xlu0 %v676_v62  ;;  %v843_v63 = vpop.f32.mrb[6].mxu0 }
 0x326   :  { %v844_v0 = vadd.f32 %v843_v63, %v2877_v50  ;;  %v2452_v1 = vpop.f32.mrb[7].mxu0 }
 0x328   :  { %v847_v2 = vsel %vm264_vm0, %v844_v0, -inf }
 0x329   :  { %848 = vmax.xlane.f32.xlu1 %v847_v2 }
 0x33a   :  { %516 = vrot.lane.b32.xlu1 %v2838_v38, %s2700_s21 }
 0x3aa   :  { %v341_v3 = vpop.xlane.xlu1 %340 }
 0x3ab   :  { %v342_v5 = vsub.f32 %v336_v52, %v341_v3 }
 0x3ad   :  { %v343_v6 = vmul.f32 1.442695, %v342_v5 }
 0x3ae   :  { %v507_v8 = vpop.xlane.xlu0 %506 }
 0x3af   :  { %2605 = vpow2.f32 %v343_v6  ;;  %v508_v9 = vsub.f32 %v502_v56, %v507_v8 }
 0x3b1   :  { %v509_v10 = vmul.f32 1.442695, %v508_v9  ;;  %v2589_v9 = vld [vmem:[%s3179_s6] sm:$0xff]  }
 0x3b2   :  { %v678_v20 = vpop.xlane.xlu0 %677 }
 0x3b3   :  { %2607 = vpow2.f32 %v509_v10  ;;  %v679_v21 = vsub.f32 %v673_v60, %v678_v20  ;;  %v2590_v10 = vld [vmem:[%s3179_s6 + $0x8] sm:$0xff]  }
 0x3b5   :  { %v680_v22 = vmul.f32 1.442695, %v679_v21 }
 0x3b6   :  { %v849_v11 = vpop.xlane.xlu1 %848 }
 0x3b7   :  { %v850_v12 = vsub.f32 %v844_v0, %v849_v11  ;;  %v2592_v11 = vld [vmem:[%s3180_s7 + $0x8] sm:$0xff]  }
 0x3b9   :  { %v2606_v13 = vpop.eup %2605  ;;  %v851_v14 = vmul.f32 1.442695, %v850_v12 }
 0x3ba   :  { %v345_v15 = vsel %vm264_vm0, %v2606_v13, 0.0  ;;  %v517_v25 = vpop.permute.xlu1 %516 }
 0x3bb   :  { %2609 = vpow2.f32 %v851_v14  ;;  %346 = vadd.xlane.f32.xlu0 %v345_v15 }
 0x3bc   :  { %2611 = vpow2.f32 %v680_v22  ;;  %v2593_v22 = vld [vmem:[%s3180_s7 + $0x10] sm:$0xff]  }
 0x3bd   :  { %v2608_v16 = vpop.eup %2607 }
 0x3be   :  { %v511_v17 = vsel %vm264_vm0, %v2608_v16, 0.0 }
 0x3bf   :  { %512 = vadd.xlane.f32.xlu1 %v511_v17 }
 0x3c5   :  { %v2610_v18 = vpop.eup %2609 }
 0x3c6   :  { %v853_v19 = vsel %vm264_vm0, %v2610_v18, 0.0  ;;  %v2612_v23 = vpop.eup %2611 }
 0x3c7   :  { %854 = vadd.xlane.f32.xlu1 %v853_v19  ;;  %v682_v24 = vsel %vm264_vm0, %v2612_v23, 0.0 }
 0x3d1   :  { %350 = vrot.lane.b32.xlu0 %v2838_v38, %s2701_s22 }
 0x3d8   :  { %687 = vrot.lane.b32.xlu1 %v2838_v38, %s2702_s23 }
 0x3f0   :  { %683 = vadd.xlane.f32.xlu0 %v682_v24  ;;  %v2267_v24 = vld [vmem:[%s3181_s8 + $0x1] ss:$0 sm:$0xff] }
 0x406   :  { %858 = vrot.lane.b32.xlu0 %v2838_v38, %s2703_s24 }
 0x448   :  { %v347_v26 = vpop.xlane.xlu0 %346 }
 0x449   :  { %2613 = vrcp.f32 %v347_v26 }
 0x44c   :  { %v513_v27 = vpop.xlane.xlu1 %512  ;;  %v351_v28 = vpop.permute.xlu0 %350 }
 0x44d   :  { %2615 = vrcp.f32 %v513_v27  ;;  %2424 = vmatpush3.msra.mxu1 %v351_v28 }
 0x44e   :  { %2433 = vmatprep.subr.mxu1 %v2690_v4 }
 0x453   :  { %v2614_v29 = vpop.eup %2613 }
 0x454   :  { %v349_v30 = vmul.f32 %v2614_v29, %v2606_v13  ;;  %v855_v32 = vpop.xlane.xlu1 %854 }
 0x456   :  { %2426 = vmatmul.mubr.msk.f32.vlgmr.msra.gmra.mrb[8].mxu1 %vm264_vm0, %v349_v30 }
 0x457   :  { %v2616_v33 = vpop.eup %2615  ;;  %2434 = vmatpush3.msra.mxu1 %v517_v25  ;;  %2435 = vmatprep.mubr.msk.f32.mxu1 %vm3185_vm4, %v2690_v4 }
 0x458   :  { %v515_v34 = vmul.f32 %v2616_v33, %v2608_v16  ;;  %v688_v35 = vpop.permute.xlu1 %687  ;;  %2443 = vmatprep.subr.mxu1 %v2690_v4  ;;  %v2265_v16 = vld [vmem:[%s3181_s8 + $0x4] ss:$0 sm:$0xff]  ;;  %v2271_v33 = vld [vmem:[%s3181_s8 + $0x3] ss:$0 sm:$0xff] }
 0x45a   :  { %2436 = vmatmul.mubr.msk.f32.vlgmr.msra.gmra.mrb[10].mxu1 %vm264_vm0, %v515_v34 }
 0x45b   :  { %2444 = vmatpush3.msra.mxu1 %v688_v35  ;;  %2445 = vmatprep.mubr.msk.f32.mxu1 %vm3185_vm4, %v2690_v4 }
 0x45c   :  { %2453 = vmatprep.subr.mxu1 %v2690_v4 }
 0x47d   :  { %v684_v36 = vpop.xlane.xlu0 %683 }
 0x47e   :  { %2617 = vrcp.f32 %v684_v36 }
 0x47f   :  { %2619 = vrcp.f32 %v855_v32 }
 0x481   :  { %v859_v40 = vpop.permute.xlu0 %858 }
 0x488   :  { %v2618_v37 = vpop.eup %2617 }
 0x489   :  { %v686_v38 = vmul.f32 %v2618_v37, %v2612_v23  ;;  %v2620_v39 = vpop.eup %2619  ;;  %v2594_v23 = vld [vmem:[%s3180_s7 + $0x18] sm:$0xff]  }
 0x48a   :  { %v857_v41 = vmul.f32 %v2620_v39, %v2610_v18  ;;  %v2266_v18 = vld [vmem:[%s3181_s8 + $0x5] ss:$0 sm:$0xff] }
 0x48b   :  { %2446 = vmatmul.mubr.msk.f32.vlgmr.msra.gmra.mrb[12].mxu1 %vm264_vm0, %v686_v38 }
 0x48c   :  { %2454 = vmatpush3.msra.mxu1 %v859_v40  ;;  %2455 = vmatprep.mubr.msk.f32.mxu1 %vm3185_vm4, %v2690_v4 }
 0x48d   :  { %2466 = vmatprep.subr.bf16.mxu1 %v2690_v4 }
 0x48f   :  { %2456 = vmatmul.mubr.msk.f32.vlgmr.msra.gmra.mrb[14].mxu1 %vm264_vm0, %v857_v41 }
 0x490   :  { %2470 = vmatprep.mubr.msk.bf16.mxu1 %vm3185_vm4, %v2690_v4  ;;  %2467 = vmatpush3.bf16.msra.mxu1 %v2589_v9 }
 0x491   :  { %2468 = vmatprep.subr.bf16.mxu1 %v2690_v4 }
 0x494   :  { %2469 = vmatpush3.bf16.msra.mxu1 %v2590_v10 }
 0x495   :  { %2486 = vmatprep.subr.bf16.mxu1 %v2690_v4 }
 0x529   :  { %v422_v42 = vpop.f32.mrb[8].mxu1 }
 0x52a   :  { %426 = vst.msk [vmem:[#allocation2] sm:$0xff] %vm264_vm0, %v422_v42  ;;  %v2427_v43 = vpop.f32.mrb[9].mxu1 }
 0x52d   :  { %v588_v44 = vpop.f32.mrb[10].mxu1 }
 0x52e   :  { %593 = vrot.lane.b32.xlu1 %v588_v44, %s2704_s25  ;;  %v2437_v45 = vpop.f32.mrb[11].mxu1 }
 0x55e   :  { %v759_v48 = vpop.f32.mrb[12].mxu1 }
 0x55f   :  { %764 = vrot.lane.b32.xlu0 %v759_v48, %s2705_s30  ;;  %v2447_v49 = vpop.f32.mrb[13].mxu1 }
 0x562   :  { %v930_v51 = vpop.f32.mrb[14].mxu1 }
 0x563   :  { %935 = vrot.lane.b32.xlu1 %v930_v51, %s2706_s10  ;;  %v2457_v52 = vpop.f32.mrb[15].mxu1 }
 0x5a0   :  { %v594_v53 = vpop.permute.xlu1 %593 }
 0x5a1   :  { %597 = vst.msk [vmem:[#allocation2] sm:$0xff] %vm596_vm11, %v594_v53  ;;  %v2277_v53 = vld [vmem:[%s3181_s8 + $0x6] ss:$0 sm:$0xff] }
 0x5d1   :  { %v765_v54 = vpop.permute.xlu0 %764 }
 0x5d2   :  { %768 = vst.msk [vmem:[#allocation2] sm:$0xff] %vm767_vm12, %v765_v54 }
 0x5d5   :  { %v936_v55 = vpop.permute.xlu1 %935 }
 0x5d6   :  { %939 = vst.msk [vmem:[#allocation2] sm:$0xff] %vm938_vm14, %v936_v55  ;;  %v2278_v55 = vld [vmem:[%s3181_s8 + $0x7] ss:$0 sm:$0xff] }
 0x5dd   :  { %v941_v56 = vld [vmem:[#allocation2] sm:$0xff] }
 0x5de   :  { %v942_v57 = vpack.c.bf16 %v941_v56, %v941_v56 }
 0x5e0   :  { %2463 = vmatmul.mubr.msk.bf16.vlgmr.msra.gmra.mrb[8].mxu0 %vm150_vm13, %v942_v57 }
 0x5e1   :  { %2482 = vmatprep.mubr.msk.bf16.mxu0 %vm3185_vm4, %v2690_v4 }
 0x6b3   :  { %v1000_v59 = vpop.f32.mrb[8].mxu0 }
 0x6b4   :  { %v1001_v60 = vadd.f32 %v2261_v58, %v1000_v59  ;;  %v2464_v61 = vpop.f32.mrb[9].mxu0  ;;  %v2284_v59 = vld [vmem:[%s3181_s8 + $0x8] ss:$0 sm:$0xff] }
 0x6b5   :  { %v1003_v62 = vpop.f32.mrb[10].mxu0 }
 0x6b6   :  { %v2465_v63 = vpop.f32.mrb[11].mxu0  ;;  %v1008_v0 = vadd.f32 %v1001_v60, %v2828_v31  ;;  %v2591_v31 = vld [vmem:[%s3180_s7] sm:$0xff]  }
 0x6b7   :  { %2475 = vmatpush3.bf16.msra.mxu0 %v2591_v31 }
 0x6b8   :  { %v1009_v1 = vsel %vm150_vm13, %v1008_v0, 0.0  ;;  %2476 = vmatprep.subr.bf16.mxu0 %v2690_v4 }
 0x6b9   :  { %1010 = vadd.xlane.f32.xlu0 %v1009_v1 }
 0x6bb   :  { %2477 = vmatpush3.bf16.msra.mxu0 %v2592_v11 }
 0x6bc   :  { %2478 = vmatprep.subr.bf16.mxu0 %v2690_v4 }
 0x6bf   :  { %2479 = vmatpush3.bf16.msra.mxu0 %v2593_v22 }
 0x6c0   :  { %2480 = vmatprep.subr.bf16.mxu0 %v2690_v4 }
 0x6c3   :  { %2481 = vmatpush3.bf16.msra.mxu0 %v2594_v23 }
 0x6c4   :  { %2504 = vmatprep.subr.mxu0 %v2690_v4 }
 0x746   :  { %v1011_v2 = vpop.xlane.xlu0 %1010 }
 0x747   :  { %v1013_v3 = vmul.f32 0.03125, %v1011_v2 }
 0x749   :  { %v1014_v5 = vsub.f32 %v1008_v0, %v1013_v3 }
 0x74b   :  { %v1015_v6 = vmul.f32 %v1014_v5, %v1014_v5 }
 0x74d   :  { %v1016_v8 = vsel %vm150_vm13, %v1015_v6, 0.0 }
 0x74e   :  { %1017 = vadd.xlane.f32.xlu1 %v1016_v8 }
 0x7db   :  { %v1018_v12 = vpop.xlane.xlu1 %1017 }
 0x7dc   :  { %v1019_v13 = vmul.f32 0.03125, %v1018_v12 }
 0x7de   :  { %v1020_v14 = vadd.f32 1e-05, %v1019_v13 }
 0x7e0   :  { %2621 = vrsqrt.f32 %v1020_v14 }
 0x7ea   :  { %v2622_v15 = vpop.eup %2621 }
 0x7eb   :  { %v1022_v17 = vmul.f32 %v2622_v15, %v1014_v5 }
 0x7ed   :  { %v1027_v19 = vmul.f32 %v2265_v16, %v1022_v17 }
 0x7ef   :  { %v1032_v20 = vadd.f32 %v2266_v18, %v1027_v19 }
 0x7f1   :  { %v1037_v21 = vpack.c.bf16 %v1032_v20, %v1032_v20 }
 0x7f3   :  { %2471 = vmatmul.mubr.msk.bf16.vlgmr.msra.gmra.mrb[16].mxu1 %vm150_vm13, %v1037_v21 }
 0x7f4   :  { %2490 = vmatprep.mubr.msk.bf16.mxu1 %vm3185_vm4, %v2690_v4  ;;  %2487 = vmatpush3.bf16.msra.mxu1 %v2595_v46 }
 0x7f5   :  { %2488 = vmatprep.subr.bf16.mxu1 %v2690_v4 }
 0x7f8   :  { %2489 = vmatpush3.bf16.msra.mxu1 %v2596_v47 }
 0x7f9   :  { %2494 = vmatprep.subr.mxu1 %v2690_v4 }
 0x8c6   :  { %v1095_v25 = vpop.f32.mrb[16].mxu1 }
 0x8c7   :  { %v1096_v26 = vadd.f32 %v2267_v24, %v1095_v25  ;;  %v2472_v27 = vpop.f32.mrb[17].mxu1 }
 0x8c8   :  { %v1098_v28 = vpop.f32.mrb[18].mxu1 }
 0x8c9   :  { %v1101_v29 = vmax.f32 %v1096_v26, 0.0  ;;  %v2473_v30 = vpop.f32.mrb[19].mxu1 }
 0x8cb   :  { %v1102_v32 = vpack.c.bf16 %v1101_v29, %v1101_v29 }
 0x8cd   :  { %2483 = vmatmul.mubr.msk.bf16.vlgmr.msra.gmra.mrb[12].mxu0 %vm1139_vm15, %v1102_v32 }
 0x8ce   :  { %2506 = vmatprep.mubr.msk.f32.mxu0 %vm3185_vm4, %v2690_v4 }
 0x9a0   :  { %v1177_v34 = vpop.f32.mrb[12].mxu0 }
 0x9a1   :  { %v1178_v35 = vadd.f32 %v2271_v33, %v1177_v34  ;;  %v2484_v36 = vpop.f32.mrb[13].mxu0 }
 0x9a2   :  { %v1180_v37 = vpop.f32.mrb[14].mxu0 }
 0x9a3   :  { %v2485_v38 = vpop.f32.mrb[15].mxu0  ;;  %v1183_v39 = vadd.f32 %v1178_v35, %v1032_v20 }
 0x9a5   :  { %v1184_v40 = vsel %vm150_vm13, %v1183_v39, 0.0 }
 0x9a6   :  { %1185 = vadd.xlane.f32.xlu0 %v1184_v40 }
 0xa33   :  { %v1186_v41 = vpop.xlane.xlu0 %1185 }
 0xa34   :  { %v1187_v42 = vmul.f32 0.03125, %v1186_v41 }
 0xa36   :  { %v1188_v43 = vsub.f32 %v1183_v39, %v1187_v42 }
 0xa38   :  { %v1189_v44 = vmul.f32 %v1188_v43, %v1188_v43 }
 0xa3a   :  { %v1190_v45 = vsel %vm150_vm13, %v1189_v44, 0.0 }
 0xa3b   :  { %1191 = vadd.xlane.f32.xlu0 %v1190_v45 }
 0xac8   :  { %v1192_v48 = vpop.xlane.xlu0 %1191 }
 0xac9   :  { %v1193_v49 = vmul.f32 0.03125, %v1192_v48 }
 0xacb   :  { %v1194_v51 = vadd.f32 1e-05, %v1193_v49 }
 0xacd   :  { %2623 = vrsqrt.f32 %v1194_v51 }
 0xad7   :  { %v2624_v52 = vpop.eup %2623 }
 0xad8   :  { %v1196_v54 = vmul.f32 %v2624_v52, %v1188_v43 }
 0xada   :  { %v1201_v56 = vmul.f32 %v2277_v53, %v1196_v54 }
 0xadc   :  { %v2997_v57 = vadd.f32 %v2278_v55, %v1201_v56 }
 0xade   :  { %v1209_v58 = vpack.c.bf16 %v2997_v57, %v2997_v57 }
 0xae0   :  { %2491 = vmatmul.mubr.msk.bf16.vlgmr.msra.gmra.mrb[20].mxu1 %vm150_vm13, %v1209_v58 }
 0xae1   :  { %2496 = vmatprep.mubr.msk.f32.mxu1 %vm3185_vm4, %v2690_v4 }
 0xbb3   :  { %v1268_v60 = vpop.f32.mrb[20].mxu1 }
 0xbb4   :  { %v3007_v61 = vadd.f32 %v2284_v59, %v1268_v60  ;;  %v2492_v62 = vpop.f32.mrb[21].mxu1 }
 0xbb5   :  { %v1271_v63 = vpop.f32.mrb[22].mxu1 }
 0xbb6   :  { %1441 = vrot.lane.b32.xlu0 %v3007_v61, %s2695_s0  ;;  %1275 = vrot.lane.b32.xlu1 %v3007_v61, %s2693_s16  ;;  %v2493_v0 = vpop.f32.mrb[23].mxu1 }
 0xbba   :  { %1609 = vrot.lane.b32.xlu0 %v3007_v61, %s2697_s19  ;;  %1439 = vrot.lane.b32.xlu1 %v3007_v61, %s2692_s3 }
 0xbbe   :  { %1779 = vrot.lane.b32.xlu0 %v3007_v61, %s2698_s20  ;;  %1611 = vrot.lane.b32.xlu1 %v3007_v61, %s2694_s17 }
 0xbc2   :  { %1781 = vrot.lane.b32.xlu1 %v3007_v61, %s2696_s18 }
 0xc28   :  { %v1442_v1 = vpop.permute.xlu0 %1441  ;;  %v1276_v2 = vpop.permute.xlu1 %1275 }
 0xc29   :  { %2495 = vmatpush3.xpose.msk.msra.mxu1 %vm264_vm0, %v1276_v2  ;;  %2505 = vmatpush3.xpose.msk.msra.mxu0 %vm264_vm0, %v1442_v1 }
 0xc2a   :  { %2514 = vmatprep.subr.mxu0 %v2690_v4  ;;  %2499 = vmatprep.subr.mxu1 %v2690_v4 }
 0xc2c   :  { %2497 = vmatmul.mubr.msk.f32.vlgmr.msra.gmra.mrb[24].mxu1 %vm264_vm0, %v3007_v61  ;;  %v1440_v3 = vpop.permute.xlu1 %1439  ;;  %v1610_v6 = vpop.permute.xlu0 %1609 }
 0xc2d   :  { %2507 = vmatmul.mubr.msk.f32.vlgmr.msra.gmra.mrb[16].mxu0 %vm264_vm0, %v1440_v3  ;;  %2501 = vmatprep.mubr.msk.f32.mxu1 %vm3185_vm4, %v2690_v4  ;;  %v2597_v3 = vld [vmem:[%s3178_s5 + $0x10] sm:$0xff]  }
 0xc2e   :  { %2516 = vmatprep.mubr.msk.f32.mxu0 %vm3185_vm4, %v2690_v4 }
 0xc30   :  { %v1612_v5 = vpop.permute.xlu1 %1611  ;;  %v1780_v9 = vpop.permute.xlu0 %1779 }
 0xc31   :  { %2515 = vmatpush3.xpose.msk.msra.mxu0 %vm264_vm0, %v1612_v5  ;;  %v2598_v5 = vld [vmem:[%s3178_s5 + $0x18] sm:$0xff]  }
 0xc32   :  { %2524 = vmatprep.subr.mxu0 %v2690_v4 }
 0xc34   :  { %2517 = vmatmul.mubr.msk.f32.vlgmr.msra.gmra.mrb[18].mxu0 %vm264_vm0, %v1610_v6  ;;  %v1782_v8 = vpop.permute.xlu1 %1781 }
 0xc35   :  { %2525 = vmatpush3.xpose.msk.msra.mxu0 %vm264_vm0, %v1782_v8  ;;  %2526 = vmatprep.mubr.msk.f32.mxu0 %vm3185_vm4, %v2690_v4 }
 0xc36   :  { %2534 = vmatprep.subr.bf16.mxu0 %v2690_v4 }
 0xc38   :  { %2527 = vmatmul.mubr.msk.f32.vlgmr.msra.gmra.mrb[20].mxu0 %vm264_vm0, %v1780_v9 }
 0xc39   :  { %2538 = vmatprep.mubr.msk.bf16.mxu0 %vm3185_vm4, %v2690_v4  ;;  %2535 = vmatpush3.bf16.msra.mxu0 %v2597_v3 }
 0xc3a   :  { %2536 = vmatprep.subr.bf16.mxu0 %v2690_v4 }
 0xc3d   :  { %2537 = vmatpush3.bf16.msra.mxu0 %v2598_v5 }
 0xc3e   :  { %2550 = vmatprep.subr.bf16.mxu0 %v2690_v4 }
 0xcff   :  { %v1347_v10 = vpop.f32.mrb[24].mxu1 }
 0xd00   :  { %v1348_v31 = vadd.f32 %v1347_v10, %v2877_v50  ;;  %v2498_v11 = vpop.f32.mrb[25].mxu1  ;;  %v1513_v12 = vpop.f32.mrb[16].mxu0 }
 0xd01   :  { %v1514_v13 = vadd.f32 %v1513_v12, %v2877_v50  ;;  %v2508_v14 = vpop.f32.mrb[17].mxu0 }
 0xd02   :  { %v1351_v15 = vsel %vm264_vm0, %v1348_v31, -inf }
 0xd03   :  { %1352 = vmax.xlane.f32.xlu1 %v1351_v15  ;;  %v1517_v16 = vsel %vm264_vm0, %v1514_v13, -inf  ;;  %v2305_v15 = vld [vmem:[%s3181_s8 + $0xa] ss:$0 sm:$0xff] }
 0xd04   :  { %1518 = vmax.xlane.f32.xlu0 %v1517_v16 }
 0xd07   :  { %v1683_v17 = vpop.f32.mrb[18].mxu0 }
 0xd08   :  { %v1684_v18 = vadd.f32 %v1683_v17, %v2877_v50  ;;  %v2518_v19 = vpop.f32.mrb[19].mxu0 }
 0xd0a   :  { %v1687_v20 = vsel %vm264_vm0, %v1684_v18, -inf }
 0xd0b   :  { %1688 = vmax.xlane.f32.xlu0 %v1687_v20  ;;  %v1853_v21 = vpop.f32.mrb[20].mxu0 }
 0xd0c   :  { %v1854_v22 = vadd.f32 %v1853_v21, %v2877_v50  ;;  %v2528_v23 = vpop.f32.mrb[21].mxu0 }
 0xd0d   :  { %v2236_v23 = vld [vmem:[%s3175_s2 + $0x4] sm:$0xf] }
 0xd0e   :  { %v1857_v24 = vsel %vm264_vm0, %v1854_v22, -inf }
 0xd0f   :  { %1858 = vmax.xlane.f32.xlu1 %v1857_v24  ;;  %v47_v24 = vld [vmem:[%s3175_s2] sm:$0xf] }
 0xd20   :  { %1528 = vrot.lane.b32.xlu1 %v3007_v61, %s2700_s21 }
 0xd90   :  { %v1353_v25 = vpop.xlane.xlu1 %1352 }
 0xd91   :  { %v1354_v26 = vsub.f32 %v1348_v31, %v1353_v25  ;;  %v1519_v27 = vpop.xlane.xlu0 %1518  ;;  %v50_v25 = vld [vmem:[%s3174_s1] sm:$0xf] }
 0xd92   :  { %v1520_v28 = vsub.f32 %v1514_v13, %v1519_v27 }
 0xd93   :  { %v1355_v29 = vmul.f32 1.442695, %v1354_v26  ;;  %v51_v26 = vsub.f32 %v50_v25, %v47_v24 }
 0xd94   :  { %v1521_v30 = vmul.f32 1.442695, %v1520_v28 }
 0xd95   :  { %2625 = vpow2.f32 %v1355_v29 }
 0xd96   :  { %2627 = vpow2.f32 %v1521_v30 }
 0xd98   :  { %v1689_v40 = vpop.xlane.xlu0 %1688 }
 0xd99   :  { %v1690_v41 = vsub.f32 %v1684_v18, %v1689_v40  ;;  %v2602_v40 = vld [vmem:[%s3180_s7 + $0x28] sm:$0xff]  }
 0xd9b   :  { %v1691_v42 = vmul.f32 1.442695, %v1690_v41 }
 0xd9c   :  { %v1859_v32 = vpop.xlane.xlu1 %1858 }
 0xd9d   :  { %v1860_v33 = vsub.f32 %v1854_v22, %v1859_v32 }
 0xd9f   :  { %v2626_v34 = vpop.eup %2625  ;;  %v1861_v35 = vmul.f32 1.442695, %v1860_v33 }
 0xda0   :  { %v2628_v50 = vpop.eup %2627  ;;  %v1357_v36 = vsel %vm264_vm0, %v2626_v34, 0.0  ;;  %v1529_v45 = vpop.permute.xlu1 %1528 }
 0xda1   :  { %2629 = vpow2.f32 %v1861_v35  ;;  %1358 = vadd.xlane.f32.xlu0 %v1357_v36  ;;  %v1523_v37 = vsel %vm264_vm0, %v2628_v50, 0.0  ;;  %v2600_v36 = vld [vmem:[%s3179_s6 + $0x18] sm:$0xff]  }
 0xda2   :  { %1524 = vadd.xlane.f32.xlu1 %v1523_v37  ;;  %2631 = vpow2.f32 %v1691_v42 }
 0xdab   :  { %v2630_v38 = vpop.eup %2629 }
 0xdac   :  { %v1863_v39 = vsel %vm264_vm0, %v2630_v38, 0.0  ;;  %v2632_v43 = vpop.eup %2631 }
 0xdad   :  { %1864 = vadd.xlane.f32.xlu1 %v1863_v39  ;;  %v1693_v44 = vsel %vm264_vm0, %v2632_v43, 0.0 }
 0xdb7   :  { %1362 = vrot.lane.b32.xlu0 %v3007_v61, %s2701_s22  ;;  %s2707_s22 = smov [#allocation6]  }
 0xdbe   :  { %1698 = vrot.lane.b32.xlu1 %v3007_v61, %s2702_s23  ;;  %s2227_s23 = sshll.u32 %s2707_s22, 4  ;;  %s2228_s23 = int_to_ptr.vmem [resolvable:$true] %s2227_s23 }
 0xdbf   :  { %p2668_p7 = scmp.lt.s32.totalorder %s2228_s23, %s2228_s23 }
 0xdd6   :  { %1694 = vadd.xlane.f32.xlu0 %v1693_v44 }
 0xdec   :  { %1868 = vrot.lane.b32.xlu0 %v3007_v61, %s2703_s24  ;;  %s2663_s24 = scalar_lea.vmem %s2228_s23, 128 }
 0xded   :  { %p2664_p6 = scmp.ne.s32.totalorder %s2228_s23, %s2663_s24  ;;  %p2669_p8 = scmp.lt.s32.totalorder %s2663_s24, %s2663_s24 }
 0xdef   :  { %p2670_p9 = por %p2669_p8, %p2668_p7 }
 0xdf1   :  { %p2671_p10 = pnand %p2670_p9, %p2664_p6 }
 0xe2e   :  { %v1359_v46 = vpop.xlane.xlu0 %1358 }
 0xe2f   :  { %2633 = vrcp.f32 %v1359_v46  ;;  %v1525_v47 = vpop.xlane.xlu1 %1524 }
 0xe30   :  { %2635 = vrcp.f32 %v1525_v47 }
 0xe32   :  { %v1363_v48 = vpop.permute.xlu0 %1362 }
 0xe33   :  { %2500 = vmatpush3.msra.mxu1 %v1363_v48  ;;  %v2311_v48 = vld [vmem:[%s3181_s8 + $0xc] ss:$0 sm:$0xff] }
 0xe34   :  { %2509 = vmatprep.subr.mxu1 %v2690_v4 }
 0xe39   :  { %v2634_v49 = vpop.eup %2633 }
 0xe3a   :  { %v1361_v51 = vmul.f32 %v2634_v49, %v2626_v34  ;;  %v1865_v52 = vpop.xlane.xlu1 %1864  ;;  %v2636_v53 = vpop.eup %2635 }
 0xe3b   :  { %v1527_v54 = vmul.f32 %v2636_v53, %v2628_v50  ;;  %v2599_v50 = vld [vmem:[%s3179_s6 + $0x10] sm:$0xff]  }
 0xe3c   :  { %2502 = vmatmul.mubr.msk.f32.vlgmr.msra.gmra.mrb[26].mxu1 %vm264_vm0, %v1361_v51  ;;  %v2312_v51 = vld [vmem:[%s3181_s8 + $0xd] ss:$0 sm:$0xff] }
 0xe3d   :  { %2510 = vmatpush3.msra.mxu1 %v1529_v45  ;;  %2511 = vmatprep.mubr.msk.f32.mxu1 %vm3185_vm4, %v2690_v4 }
 0xe3e   :  { %v1699_v55 = vpop.permute.xlu1 %1698  ;;  %2519 = vmatprep.subr.mxu1 %v2690_v4 }
 0xe40   :  { %2512 = vmatmul.mubr.msk.f32.vlgmr.msra.gmra.mrb[28].mxu1 %vm264_vm0, %v1527_v54 }
 0xe41   :  { %2520 = vmatpush3.msra.mxu1 %v1699_v55  ;;  %2521 = vmatprep.mubr.msk.f32.mxu1 %vm3185_vm4, %v2690_v4  ;;  %v2603_v55 = vld [vmem:[%s3180_s7 + $0x30] sm:$0xff]  }
 0xe42   :  { %2529 = vmatprep.subr.mxu1 %v2690_v4 }
 0xe63   :  { %v1695_v56 = vpop.xlane.xlu0 %1694 }
 0xe64   :  { %2637 = vrcp.f32 %v1695_v56  ;;  %v2604_v56 = vld [vmem:[%s3180_s7 + $0x38] sm:$0xff]  }
 0xe65   :  { %2639 = vrcp.f32 %v1865_v52 }
 0xe66   :  { %2641 = vrcp.f32 %v2236_v23 }
 0xe67   :  { %v1869_v61 = vpop.permute.xlu0 %1868 }
 0xe6e   :  { %v2638_v58 = vpop.eup %2637 }
 0xe6f   :  { %v1697_v59 = vmul.f32 %v2638_v58, %v2632_v43  ;;  %v2640_v60 = vpop.eup %2639 }
 0xe70   :  { %v1867_v62 = vmul.f32 %v2640_v60, %v2630_v38  ;;  %v2642_v27 = vpop.eup %2641  ;;  %v2601_v38 = vld [vmem:[%s3180_s7 + $0x20] sm:$0xff]  }
 0xe71   :  { %2522 = vmatmul.mubr.msk.f32.vlgmr.msra.gmra.mrb[30].mxu1 %vm264_vm0, %v1697_v59  ;;  %v53_v28 = vmul.f32 %v2642_v27, %v51_v26 }
 0xe72   :  { %2530 = vmatpush3.msra.mxu1 %v1869_v61  ;;  %2531 = vmatprep.mubr.msk.f32.mxu1 %vm3185_vm4, %v2690_v4 }
 0xe73   :  { %2542 = vmatprep.subr.bf16.mxu1 %v2690_v4 }
 0xe75   :  { %2532 = vmatmul.mubr.msk.f32.vlgmr.msra.gmra.mrb[32].mxu1 %vm264_vm0, %v1867_v62 }
 0xe76   :  { %2546 = vmatprep.mubr.msk.bf16.mxu1 %vm3185_vm4, %v2690_v4  ;;  %2543 = vmatpush3.bf16.msra.mxu1 %v2599_v50 }
 0xe77   :  { %2544 = vmatprep.subr.bf16.mxu1 %v2690_v4 }
 0xe7a   :  { %2545 = vmatpush3.bf16.msra.mxu1 %v2600_v36  ;;  %v2315_v36 = vld [vmem:[%s3181_s8 + $0xe] sm:$0x1] }
 0xf0f   :  { %v1434_v63 = vpop.f32.mrb[26].mxu1 }
 0xf10   :  { %1438 = vst.msk [vmem:[#allocation2] sm:$0xff] %vm264_vm0, %v1434_v63  ;;  %v2503_v0 = vpop.f32.mrb[27].mxu1 }
 0xf13   :  { %v1600_v1 = vpop.f32.mrb[28].mxu1 }
 0xf14   :  { %1605 = vrot.lane.b32.xlu1 %v1600_v1, %s2704_s25  ;;  %v2513_v2 = vpop.f32.mrb[29].mxu1 }
 0xf44   :  { %v1770_v6 = vpop.f32.mrb[30].mxu1 }
 0xf45   :  { %1775 = vrot.lane.b32.xlu0 %v1770_v6, %s2705_s30  ;;  %v2523_v8 = vpop.f32.mrb[31].mxu1  ;;  %v2321_v6 = vld [vmem:[%s3181_s8 + $0x9] ss:$0 sm:$0xff] }
 0xf48   :  { %v1940_v9 = vpop.f32.mrb[32].mxu1 }
 0xf49   :  { %1945 = vrot.lane.b32.xlu1 %v1940_v9, %s2706_s10  ;;  %v2533_v10 = vpop.f32.mrb[33].mxu1 }
 0xf86   :  { %v1606_v31 = vpop.permute.xlu1 %1605 }
 0xf87   :  { %1608 = vst.msk [vmem:[#allocation2] sm:$0xff] %vm596_vm11, %v1606_v31 }
 0xfb7   :  { %v1776_v11 = vpop.permute.xlu0 %1775 }
 0xfb8   :  { %1778 = vst.msk [vmem:[#allocation2] sm:$0xff] %vm767_vm12, %v1776_v11 }
 0xfbb   :  { %v1946_v12 = vpop.permute.xlu1 %1945 }
 0xfbc   :  { %1948 = vst.msk [vmem:[#allocation2] sm:$0xff] %vm938_vm14, %v1946_v12 }
 0xfc3   :  { %v1950_v13 = vld [vmem:[#allocation2] sm:$0xff] }
 0xfc4   :  { %v1951_v14 = vpack.c.bf16 %v1950_v13, %v1950_v13 }
 0xfc6   :  { %2539 = vmatmul.mubr.msk.bf16.vlgmr.msra.gmra.mrb[24].mxu0 %vm150_vm13, %v1951_v14 }
 0xfc7   :  { %2558 = vmatprep.mubr.msk.bf16.mxu0 %vm3185_vm4, %v2690_v4  ;;  %2551 = vmatpush3.bf16.msra.mxu0 %v2601_v38  ;;  %v2316_v38 = vld [vmem:[%s3181_s8 + $0xf] sm:$0x1] }
 0xfc8   :  { %2552 = vmatprep.subr.bf16.mxu0 %v2690_v4 }
 0xfcb   :  { %2553 = vmatpush3.bf16.msra.mxu0 %v2602_v40  ;;  %v2212_v40 = vsub.s32 0, %v2776_v7 }
 0xfcc   :  { %2554 = vmatprep.subr.bf16.mxu0 %v2690_v4 }
 0xfcf   :  { %2555 = vmatpush3.bf16.msra.mxu0 %v2603_v55 }
 0xfd0   :  { %2556 = vmatprep.subr.bf16.mxu0 %v2690_v4 }
 0xfd3   :  { %2557 = vmatpush3.bf16.msra.mxu0 %v2604_v56 }
0x1099   :  { %v2010_v16 = vpop.f32.mrb[24].mxu0 }
0x109a   :  { %v2011_v17 = vadd.f32 %v2305_v15, %v2010_v16  ;;  %v2540_v18 = vpop.f32.mrb[25].mxu0 }
0x109b   :  { %v2013_v19 = vpop.f32.mrb[26].mxu0 }
0x109c   :  { %v2541_v20 = vpop.f32.mrb[27].mxu0  ;;  %v2018_v21 = vadd.f32 %v2011_v17, %v2997_v57  ;;  %v54_v57 = vmul.f32 %v53_v28, %v53_v28 }
0x109e   :  { %v2019_v22 = vsel %vm150_vm13, %v2018_v21, 0.0  ;;  %v56_v29 = vsel %vm55_vm1, %v54_v57, 0.0 }
0x109f   :  { %2020 = vadd.xlane.f32.xlu0 %v2019_v22 }
0x10a3   :  { %57 = vadd.xlane.f32.xlu0 %v56_v29 }
0x112c   :  { %v2021_v30 = vpop.xlane.xlu0 %2020 }
0x112d   :  { %v2022_v32 = vmul.f32 0.03125, %v2021_v30 }
0x112f   :  { %v2023_v33 = vsub.f32 %v2018_v21, %v2022_v32  ;;  %v2333_v21 = vld [vmem:[%s3181_s8 + $0xb] ss:$0 sm:$0xff] }
0x1130   :  { %v58_v37 = vpop.xlane.xlu0 %57 }
0x1131   :  { %v2024_v34 = vmul.f32 %v2023_v33, %v2023_v33  ;;  %v59_v39 = vmul.f32 -0.5, %v58_v37 }
0x1133   :  { %v2025_v35 = vsel %vm150_vm13, %v2024_v34, 0.0  ;;  %v60_v41 = vmul.f32 1.442695, %v59_v39 }
0x1134   :  { %2026 = vadd.xlane.f32.xlu1 %v2025_v35 }
0x1135   :  { %2643 = vpow2.f32 %v60_v41 }
0x113f   :  { %v2644_v42 = vpop.eup %2643 }
0x1140   :  { %v63_v43 = vsel %vm62_vm2, %v2644_v42, 0.0 }
0x1141   :  { %64 = vadd.xlane.f32.xlu0 %v63_v43 }
0x11c1   :  { %v2027_v44 = vpop.xlane.xlu1 %2026 }
0x11c2   :  { %v2028_v45 = vmul.f32 0.03125, %v2027_v44 }
0x11c4   :  { %v2029_v46 = vadd.f32 1e-05, %v2028_v45 }
0x11c6   :  { %2645 = vrsqrt.f32 %v2029_v46 }
0x11ce   :  { %v65_v58 = vpop.xlane.xlu0 %64 }
0x11cf   :  { %v66_v59 = vrot.slane %v65_v58, 4 }
0x11d0   :  { %v2646_v47 = vpop.eup %2645 }
0x11d1   :  { %v2031_v49 = vmul.f32 %v2646_v47, %v2023_v33  ;;  %v67_v60 = vadd.f32 %v66_v59, %v65_v58 }
0x11d3   :  { %v2036_v52 = vmul.f32 %v2311_v48, %v2031_v49  ;;  %v68_v61 = vrot.slane %v67_v60, 2 }
0x11d5   :  { %v2041_v53 = vadd.f32 %v2312_v51, %v2036_v52  ;;  %v69_v62 = vadd.f32 %v68_v61, %v67_v60 }
0x11d7   :  { %v2049_v54 = vpack.c.bf16 %v2041_v53, %v2041_v53  ;;  %v70_v63 = vrot.slane %v69_v62, 1 }
0x11d9   :  { %2547 = vmatmul.mubr.msk.bf16.vlgmr.msra.gmra.mrb[36].mxu1 %vm150_vm13, %v2049_v54  ;;  %v71_v0 = vadd.f32 %v70_v63, %v69_v62 }
0x11db   :  { %2562 = vpush %v71_v0 }
0x120c   :  { %s2563_s3 = spop %2562 }
0x120d   :  { %p73_p5 = scmp.eq.f32.partialorder %s2563_s3, 0.0 }
0x120f   :  { %s3187_s3 = smov (%p73_p5, %s2563_s3), 1.0 }
0x1210   :  { %v75_v1 = vstv %s3187_s3 }
0x1211   :  { %2647 = vrcp.f32 %v75_v1 }
0x121b   :  { %v2648_v2 = vpop.eup %2647 }
0x121c   :  { %v77_v4 = vmul.f32 %v2648_v2, %v2644_v42 }
0x121e   :  { %vm78_vm5 = vcmp.ne.f32.partialorder %v77_v4, %v77_v4 }
0x121f   :  { %v79_v3 = vsel %vm78_vm5, 1.0, %v77_v4 }
0x1220   :  { %v80_v5 = vsel %vm62_vm2, %v79_v3, 0.0 }
0x1221   :  { %81 = vadd.xlane.f32.xlu0 %v80_v5 }
0x12ac   :  { %v2108_v8 = vpop.f32.mrb[36].mxu1 }
0x12ad   :  { %v2109_v9 = vadd.f32 %v2321_v6, %v2108_v8  ;;  %v2548_v10 = vpop.f32.mrb[37].mxu1 }
0x12ae   :  { %v2111_v31 = vpop.f32.mrb[38].mxu1  ;;  %v82_v14 = vpop.xlane.xlu0 %81 }
0x12af   :  { %v2114_v11 = vmax.f32 %v2109_v9, 0.0  ;;  %v2549_v12 = vpop.f32.mrb[39].mxu1  ;;  %v83_v15 = vrot.slane %v82_v14, 4 }
0x12b1   :  { %v2115_v13 = vpack.c.bf16 %v2114_v11, %v2114_v11  ;;  %v84_v16 = vadd.f32 %v83_v15, %v82_v14 }
0x12b3   :  { %2559 = vmatmul.mubr.msk.bf16.vlgmr.msra.gmra.mrb[28].mxu0 %vm1139_vm15, %v2115_v13  ;;  %v85_v17 = vrot.slane %v84_v16, 2 }
0x12b5   :  { %v86_v18 = vadd.f32 %v85_v17, %v84_v16 }
0x12b7   :  { %v87_v19 = vrot.slane %v86_v18, 1 }
0x12b9   :  { %v88_v20 = vadd.f32 %v87_v19, %v86_v18 }
0x12bb   :  { %2564 = vpush %v88_v20 }
0x12ec   :  { %s2565_s5 = spop %2564 }
0x12ed   :  { %v2046_v37 = vstv %s2565_s5 }
0x12ee   :  { %v2047_v39 = vmul.f32 %v2315_v36, %v2046_v37  ;;  %v2048_v41 = vmul.f32 %v2316_v38, %v2046_v37 }
0x12f0   :  { %v2213_v43 = vrot.slane %v2047_v39, %v2212_v40  ;;  %v2218_v45 = vrot.slane %v2048_v41, %v2212_v40 }
0x1386   :  { %v2190_v22 = vpop.f32.mrb[28].mxu0 }
0x1387   :  { %v2191_v23 = vadd.f32 %v2333_v21, %v2190_v22  ;;  %v2560_v24 = vpop.f32.mrb[29].mxu0 }
0x1388   :  { %v2193_v25 = vpop.f32.mrb[30].mxu0 }
0x1389   :  { %v2561_v26 = vpop.f32.mrb[31].mxu0  ;;  %v2196_v27 = vadd.f32 %v2191_v23, %v2041_v53 }
0x138b   :  { %v2197_v28 = vsel %vm150_vm13, %v2196_v27, 0.0 }
0x138c   :  { %2198 = vadd.xlane.f32.xlu1 %v2197_v28 }
0x1419   :  { %v2199_v57 = vpop.xlane.xlu1 %2198 }
0x141a   :  { %v2200_v29 = vmul.f32 0.03125, %v2199_v57 }
0x141c   :  { %v2201_v30 = vsub.f32 %v2196_v27, %v2200_v29 }
0x141e   :  { %v2202_v32 = vmul.f32 %v2201_v30, %v2201_v30 }
0x1420   :  { %v2203_v33 = vsel %vm150_vm13, %v2202_v32, 0.0 }
0x1421   :  { %2204 = vadd.xlane.f32.xlu1 %v2203_v33 }
0x14ae   :  { %v2205_v34 = vpop.xlane.xlu1 %2204 }
0x14af   :  { %v2206_v35 = vmul.f32 0.03125, %v2205_v34 }
0x14b1   :  { %v2207_v50 = vadd.f32 1e-05, %v2206_v35 }
0x14b3   :  { %2649 = vrsqrt.f32 %v2207_v50 }
0x14bd   :  { %v2650_v42 = vpop.eup %2649 }
0x14be   :  { %v2209_v44 = vmul.f32 %v2650_v42, %v2201_v30 }
0x14c0   :  { %v2214_v46 = vmul.f32 %v2213_v43, %v2209_v44 }
0x14c2   :  { %v2219_v47 = vadd.f32 %v2218_v45, %v2214_v46 }
0x14c4   :  { %2220 = vst.msk [vmem:[#allocation6] sm:$0xff] %vm150_vm13, %v2219_v47 }
0x14c5   :  { %2674 = shalt.err (!%p2671_p10)
}
0x14c6   :  { %s2675_s2 = scalar_lea.hbm %s3182_s9, 128 }
0x14c7   :  { %p2676_p11 = scmp.ne.s32.totalorder %s3182_s9, %s2675_s2  ;;  %p2679_p12 = scmp.lt.u32.totalorder %s2675_s2, %s3182_s9 }
0x14c9   :  { %p2681_p13 = pnand %p2679_p12, %p2676_p11 }
0x14cb   :  { %2684 = shalt.err (!%p2681_p13)
}
0x14cc   :  { %2230 = dma.vmem_to_hbm [thread:$0]  %s2228_s23, 128, %s3182_s9, [#allocation4]  }
0x14cd   :  { %2687 = dma.done.wait [#allocation4], 128  }
0x14ce   :  { %2688 = vsyncadd [#allocation4], 4294967168 }
0x14cf   :  { %2234 = vsyncpa [#allocation4], 1 }
0x14d0   :  { %2235 = vsyncpa [#allocation5], 1 }

</bundles_post_ra>
